<compile_context>
chip_gen: v7x
topology: tpu7x:2x2x1
jax: 0.10.0
libtpu: 0.0.40
codegen_flags: <defaults>
</compile_context>

<pallas_src>
import functools

import jax
import jax.numpy as jnp
from jax import lax
from jax.experimental import pallas as pl
from jax.experimental.pallas import tpu as pltpu


def _round_up(n, m):
    return ((n + m - 1) // m) * m


def _pad2(a, rows, cols):
    return jnp.pad(a, ((0, rows - a.shape[0]), (0, cols - a.shape[1])))


def _bnn_kernel(x_ref, mu1_ref, std1_ref, eps1_ref, b1_ref,
                mu2_ref, std2_ref, eps2_ref, b2_ref, out_ref,
                *, matmul_dtype, samples_per_step):
    # Sample-invariant operands (constant index_map -> fetched once, block
    # stays resident across grid steps).
    x = x_ref[...]                     # already matmul_dtype (cast in wrapper)
    mu1 = mu1_ref[...]
    std1 = std1_ref[...]               # softplus(rho1), precomputed in wrapper
    b1 = b1_ref[...]
    mu2 = mu2_ref[...]
    std2 = std2_ref[...]
    b2 = b2_ref[...]

    def one_sample(t, carry):
        # w = mu + softplus(rho) * eps  -- elementwise kept in f32; only the
        # matmul operands are cast, accumulation stays f32 on the MXU.
        eps1 = eps1_ref[t].astype(jnp.float32)
        w1 = (mu1 + std1 * eps1).astype(matmul_dtype)
        h = jnp.dot(x, w1, preferred_element_type=jnp.float32)
        h = jnp.maximum(h + b1, 0.0)   # bias + ReLU in f32

        eps2 = eps2_ref[t].astype(jnp.float32)
        w2 = (mu2 + std2 * eps2).astype(matmul_dtype)
        y = jnp.dot(h.astype(matmul_dtype), w2,
                    preferred_element_type=jnp.float32) + b2

        out_ref[t] = y.astype(out_ref.dtype)
        return carry

    lax.fori_loop(0, samples_per_step, one_sample, None, unroll=True)


def bayesian_nn_forward(x, params, eps1, eps2, *,
                        matmul_dtype=jnp.float32,
                        eps_dtype=None,
                        samples_per_step=None):
    """Fused Bayesian-MLP forward as one Pallas kernel, blocked over MC samples.

    x:      [B, input_size] float32
    params: dict with mu1/rho1/b1 and mu2/rho2/b2
    eps1:   [S, input_size, hidden_size] standard-normal reparameterization noise
    eps2:   [S, hidden_size, output_size]
    matmul_dtype: jnp.float32 (bit-exact vs reference) or jnp.bfloat16
        (recommended on v5e/v6e/v7x — the MXU is bf16-native on all of them;
        elementwise weight construction and accumulation remain f32).
    eps_dtype: HBM storage dtype for the noise; defaults to bf16 when
        matmul_dtype is 2-byte (halves the dominant HBM traffic), else f32.
    samples_per_step: MC samples per grid step (auto-chosen to keep the
        double-buffered per-step blocks within a VMEM budget).

    Returns [S, B, output_size]; each sample s matches one torch forward pass.
    """
    B, input_size = x.shape
    hidden_size = params["mu1"].shape[1]
    output_size = params["mu2"].shape[1]
    S = eps1.shape[0]
    assert eps2.shape[0] == S

    matmul_dtype = jnp.dtype(matmul_dtype)
    if eps_dtype is None:
        eps_dtype = jnp.bfloat16 if matmul_dtype.itemsize == 2 else jnp.float32
    eps_dtype = jnp.dtype(eps_dtype)

    # Pad to full lanes (128) and sublanes (8 for f32 / 16 for bf16 operands):
    # lane-dense loads AND stores, exact math (padded regions are zero).
    sublane = 16 if matmul_dtype.itemsize == 2 else 8
    Bp = _round_up(B, sublane)
    Kp = _round_up(input_size, 128)
    Hp = _round_up(hidden_size, 128)
    Np = _round_up(output_size, 128)

    # softplus(rho) hoisted out of the Monte-Carlo loop: computed exactly once.
    std1 = jax.nn.softplus(params["rho1"])
    std2 = jax.nn.softplus(params["rho2"])

    xp = _pad2(x, Bp, Kp).astype(matmul_dtype)        # cast once, not per step
    mu1 = _pad2(params["mu1"], Kp, Hp)
    std1 = _pad2(std1, Kp, Hp)                         # padded std == 0 -> w == 0
    b1 = _pad2(params["b1"].reshape(1, -1), 1, Hp)
    mu2 = _pad2(params["mu2"], Hp, Np)
    std2 = _pad2(std2, Hp, Np)
    b2 = _pad2(params["b2"].reshape(1, -1), 1, Np)

    # Pick T (MC samples per grid step): biggest that keeps the double-buffered
    # per-step blocks inside a conservative VMEM budget, capped for unrolling.
    per_sample_bytes = (Kp * Hp + Hp * Np) * eps_dtype.itemsize + Bp * Np * 4
    if samples_per_step is None:
        budget = 8 << 20
        samples_per_step = max(1, min(S, 16, budget // (2 * per_sample_bytes)))
    T = int(samples_per_step)
    Sp = _round_up(S, T)

    e1 = jnp.pad(eps1, ((0, Sp - S), (0, Kp - input_size),
                        (0, Hp - hidden_size))).astype(eps_dtype)
    e2 = jnp.pad(eps2, ((0, Sp - S), (0, Hp - hidden_size),
                        (0, Np - output_size))).astype(eps_dtype)

    # Explicit VMEM budget from the actual block sums (keeps double-buffered
    # pipelining alive on v7x's 64 MiB part; harmless elsewhere).
    per_step_bytes = T * per_sample_bytes
    invariant_bytes = (Bp * Kp * matmul_dtype.itemsize
                       + 2 * (Kp * Hp + Hp * Np) * 4
                       + 8 * (Hp + Np) * 4)
    vmem_estimate = 2 * (per_step_bytes + invariant_bytes)
    vmem_limit = int(min(max(2 * vmem_estimate, 32 << 20), 64 << 20))

    kernel = functools.partial(_bnn_kernel, matmul_dtype=matmul_dtype,
                               samples_per_step=T)

    # Grid over blocks of T Monte-Carlo samples; shared operands map to the
    # same block every step, per-sample noise / output advance along axis 0.
    out = pl.pallas_call(
        kernel,
        out_shape=jax.ShapeDtypeStruct((Sp, Bp, Np), jnp.float32),
        grid=(Sp // T,),
        in_specs=[
            pl.BlockSpec((Bp, Kp), lambda s: (0, 0)),           # x
            pl.BlockSpec((Kp, Hp), lambda s: (0, 0)),           # mu1
            pl.BlockSpec((Kp, Hp), lambda s: (0, 0)),           # std1
            pl.BlockSpec((T, Kp, Hp), lambda s: (s, 0, 0)),     # eps1 block
            pl.BlockSpec((1, Hp), lambda s: (0, 0)),            # b1
            pl.BlockSpec((Hp, Np), lambda s: (0, 0)),           # mu2
            pl.BlockSpec((Hp, Np), lambda s: (0, 0)),           # std2
            pl.BlockSpec((T, Hp, Np), lambda s: (s, 0, 0)),     # eps2 block
            pl.BlockSpec((1, Np), lambda s: (0, 0)),            # b2
        ],
        out_specs=pl.BlockSpec((T, Bp, Np), lambda s: (s, 0, 0)),
        compiler_params=pltpu.CompilerParams(
            dimension_semantics=("parallel",),
            vmem_limit_bytes=vmem_limit,
        ),
    )(xp, mu1, std1, e1, b1, mu2, std2, e2, b2)

    return out[:S, :B, :output_size]


def init_params(key, input_size, hidden_size, output_size):
    """Deterministic init mirroring the PyTorch __init__ (randn * 0.1, zero bias)."""
    k1, k2, k3, k4 = jax.random.split(key, 4)
    return {
        "mu1": 0.1 * jax.random.normal(k1, (input_size, hidden_size), jnp.float32),
        "rho1": 0.1 * jax.random.normal(k2, (input_size, hidden_size), jnp.float32),
        "b1": jnp.zeros((hidden_size,), jnp.float32),
        "mu2": 0.1 * jax.random.normal(k3, (hidden_size, output_size), jnp.float32),
        "rho2": 0.1 * jax.random.normal(k4, (hidden_size, output_size), jnp.float32),
        "b2": jnp.zeros((output_size,), jnp.float32),
    }


def reference_forward(x, params, eps1_s, eps2_s):
    """Pure-JAX reference for one Monte-Carlo sample (matches the torch module)."""
    w1 = params["mu1"] + jax.nn.softplus(params["rho1"]) * eps1_s
    h = jnp.maximum(x @ w1 + params["b1"], 0.0)
    w2 = params["mu2"] + jax.nn.softplus(params["rho2"]) * eps2_s
    return h @ w2 + params["b2"]


if __name__ == "__main__":
    input_size, hidden_size, output_size = 16, 32, 8
    batch = 8
    num_samples = 4

    key = jax.random.PRNGKey(0)
    k_params, k_x, k_e1, k_e2 = jax.random.split(key, 4)

    params = init_params(k_params, input_size, hidden_size, output_size)
    x = jax.random.normal(k_x, (batch, input_size), jnp.float32)

    # Reparameterization noise (the rsample() epsilons), one draw per sample.
    eps1 = jax.random.normal(k_e1, (num_samples, input_size, hidden_size), jnp.float32)
    eps2 = jax.random.normal(k_e2, (num_samples, hidden_size, output_size), jnp.float32)

    ref = jax.vmap(lambda e1s, e2s: reference_forward(x, params, e1s, e2s))(eps1, eps2)

    # Exact (f32 matmul, f32 eps) path.
    out = bayesian_nn_forward(x, params, eps1, eps2)
    out = jax.block_until_ready(out)
    assert out.shape == (num_samples, batch, output_size)
    assert jnp.allclose(out, ref, atol=1e-5, rtol=1e-5), "f32 kernel mismatch vs reference"

    # bf16 MXU path (recommended on v5e/v6e/v7x); looser tolerance for bf16
    # matmul operands and bf16-stored noise.
    out_bf16 = bayesian_nn_forward(x, params, eps1, eps2, matmul_dtype=jnp.bfloat16)
    out_bf16 = jax.block_until_ready(out_bf16)
    assert out_bf16.shape == (num_samples, batch, output_size)
    assert jnp.allclose(out_bf16, ref, atol=5e-2, rtol=5e-2), "bf16 kernel mismatch vs reference"

    print("KERNEL_OK")
</pallas_src>

<mosaic_0001>
module attributes {stable_mosaic.version = 11 : i64} {
  func.func @_bnn_kernel(%arg0: i32, %arg1: memref<8x128xf32, #tpu.memory_space<vmem>>, %arg2: memref<128x128xf32, #tpu.memory_space<vmem>>, %arg3: memref<128x128xf32, #tpu.memory_space<vmem>>, %arg4: memref<4x128x128xf32, #tpu.memory_space<vmem>>, %arg5: memref<1x128xf32, #tpu.memory_space<vmem>>, %arg6: memref<128x128xf32, #tpu.memory_space<vmem>>, %arg7: memref<128x128xf32, #tpu.memory_space<vmem>>, %arg8: memref<4x128x128xf32, #tpu.memory_space<vmem>>, %arg9: memref<1x128xf32, #tpu.memory_space<vmem>>, %arg10: memref<4x8x128xf32, #tpu.memory_space<vmem>>) attributes {dimension_semantics = [#tpu.dimension_semantics<parallel>], iteration_bounds = array<i64: 1>, scalar_prefetch = 0 : i64, scratch_operands = 0 : i64, tpu.core_type = #tpu.core_type<tc>, window_params = [{pipeline_mode = #tpu.pipeline_mode<synchronous>, transform_indices = @transform_0, window_bounds = array<i64: 8, 128>}, {pipeline_mode = #tpu.pipeline_mode<synchronous>, transform_indices = @transform_1, window_bounds = array<i64: 128, 128>}, {pipeline_mode = #tpu.pipeline_mode<synchronous>, transform_indices = @transform_2, window_bounds = array<i64: 128, 128>}, {transform_indices = @transform_3, window_bounds = array<i64: 4, 128, 128>}, {pipeline_mode = #tpu.pipeline_mode<synchronous>, transform_indices = @transform_4, window_bounds = array<i64: 1, 128>}, {pipeline_mode = #tpu.pipeline_mode<synchronous>, transform_indices = @transform_5, window_bounds = array<i64: 128, 128>}, {pipeline_mode = #tpu.pipeline_mode<synchronous>, transform_indices = @transform_6, window_bounds = array<i64: 128, 128>}, {transform_indices = @transform_7, window_bounds = array<i64: 4, 128, 128>}, {pipeline_mode = #tpu.pipeline_mode<synchronous>, transform_indices = @transform_8, window_bounds = array<i64: 1, 128>}, {transform_indices = @transform_9, window_bounds = array<i64: 4, 8, 128>}]} {
    %c0 = arith.constant 0 : index
    %c0_0 = arith.constant 0 : index
    %0 = vector.load %arg1[%c0, %c0_0] : memref<8x128xf32, #tpu.memory_space<vmem>>, vector<8x128xf32>
    %c0_1 = arith.constant 0 : index
    %c0_2 = arith.constant 0 : index
    %1 = vector.load %arg2[%c0_1, %c0_2] : memref<128x128xf32, #tpu.memory_space<vmem>>, vector<128x128xf32>
    %c0_3 = arith.constant 0 : index
    %c0_4 = arith.constant 0 : index
    %2 = vector.load %arg3[%c0_3, %c0_4] : memref<128x128xf32, #tpu.memory_space<vmem>>, vector<128x128xf32>
    %c0_5 = arith.constant 0 : index
    %c0_6 = arith.constant 0 : index
    %3 = vector.load %arg5[%c0_5, %c0_6] : memref<1x128xf32, #tpu.memory_space<vmem>>, vector<1x128xf32>
    %c0_7 = arith.constant 0 : index
    %c0_8 = arith.constant 0 : index
    %4 = vector.load %arg6[%c0_7, %c0_8] : memref<128x128xf32, #tpu.memory_space<vmem>>, vector<128x128xf32>
    %c0_9 = arith.constant 0 : index
    %c0_10 = arith.constant 0 : index
    %5 = vector.load %arg7[%c0_9, %c0_10] : memref<128x128xf32, #tpu.memory_space<vmem>>, vector<128x128xf32>
    %c0_11 = arith.constant 0 : index
    %c0_12 = arith.constant 0 : index
    %6 = vector.load %arg9[%c0_11, %c0_12] : memref<1x128xf32, #tpu.memory_space<vmem>>, vector<1x128xf32>
    %c0_i32 = arith.constant 0 : i32
    %7 = arith.index_cast %c0_i32 : i32 to index
    %c0_13 = arith.constant 0 : index
    %c0_14 = arith.constant 0 : index
    %8 = vector.load %arg4[%7, %c0_13, %c0_14] : memref<4x128x128xf32, #tpu.memory_space<vmem>>, vector<1x128x128xf32>
    %9 = vector.shape_cast %8 : vector<1x128x128xf32> to vector<128x128xf32>
    %10 = arith.mulf %2, %9 : vector<128x128xf32>
    %11 = arith.addf %1, %10 : vector<128x128xf32>
    %cst = arith.constant dense<0.000000e+00> : vector<8x128xf32>
    %12 = tpu.matmul %0, %11, %cst {dimension_numbers = #tpu.dot_dimension_numbers<[1], [0], [0], [1], [0, 0, 1, 1], [], []>} : vector<8x128xf32>, vector<128x128xf32>, vector<8x128xf32> -> vector<8x128xf32>
    %13 = vector.broadcast %3 : vector<1x128xf32> to vector<8x128xf32>
    %14 = arith.addf %12, %13 : vector<8x128xf32>
    %cst_15 = arith.constant 0.000000e+00 : f32
    %15 = vector.broadcast %cst_15 : f32 to vector<8x128xf32>
    %16 = arith.maximumf %14, %15 : vector<8x128xf32>
    %17 = arith.index_cast %c0_i32 : i32 to index
    %c0_16 = arith.constant 0 : index
    %c0_17 = arith.constant 0 : index
    %18 = vector.load %arg8[%17, %c0_16, %c0_17] : memref<4x128x128xf32, #tpu.memory_space<vmem>>, vector<1x128x128xf32>
    %19 = vector.shape_cast %18 : vector<1x128x128xf32> to vector<128x128xf32>
    %20 = arith.mulf %5, %19 : vector<128x128xf32>
    %21 = arith.addf %4, %20 : vector<128x128xf32>
    %cst_18 = arith.constant dense<0.000000e+00> : vector<8x128xf32>
    %22 = tpu.matmul %16, %21, %cst_18 {dimension_numbers = #tpu.dot_dimension_numbers<[1], [0], [0], [1], [0, 0, 1, 1], [], []>} : vector<8x128xf32>, vector<128x128xf32>, vector<8x128xf32> -> vector<8x128xf32>
    %23 = vector.broadcast %6 : vector<1x128xf32> to vector<8x128xf32>
    %24 = arith.addf %22, %23 : vector<8x128xf32>
    %25 = arith.index_cast %c0_i32 : i32 to index
    %c0_19 = arith.constant 0 : index
    %c0_20 = arith.constant 0 : index
    %26 = vector.load %arg10[%25, %c0_19, %c0_20] : memref<4x8x128xf32, #tpu.memory_space<vmem>>, vector<1x8x128xf32>
    %27 = vector.shape_cast %26 : vector<1x8x128xf32> to vector<8x128xf32>
    %28 = vector.shape_cast %24 : vector<8x128xf32> to vector<1x8x128xf32>
    tpu.vector_store %arg10[%25, %c0_19, %c0_20], %28 {strides = array<i32>} : memref<4x8x128xf32, #tpu.memory_space<vmem>>, vector<1x8x128xf32>,
    %c1_i32 = arith.constant 1 : i32
    %29 = arith.index_cast %c1_i32 : i32 to index
    %c0_21 = arith.constant 0 : index
    %c0_22 = arith.constant 0 : index
    %30 = vector.load %arg4[%29, %c0_21, %c0_22] : memref<4x128x128xf32, #tpu.memory_space<vmem>>, vector<1x128x128xf32>
    %31 = vector.shape_cast %30 : vector<1x128x128xf32> to vector<128x128xf32>
    %32 = arith.mulf %2, %31 : vector<128x128xf32>
    %33 = arith.addf %1, %32 : vector<128x128xf32>
    %cst_23 = arith.constant dense<0.000000e+00> : vector<8x128xf32>
    %34 = tpu.matmul %0, %33, %cst_23 {dimension_numbers = #tpu.dot_dimension_numbers<[1], [0], [0], [1], [0, 0, 1, 1], [], []>} : vector<8x128xf32>, vector<128x128xf32>, vector<8x128xf32> -> vector<8x128xf32>
    %35 = vector.broadcast %3 : vector<1x128xf32> to vector<8x128xf32>
    %36 = arith.addf %34, %35 : vector<8x128xf32>
    %cst_24 = arith.constant 0.000000e+00 : f32
    %37 = vector.broadcast %cst_24 : f32 to vector<8x128xf32>
    %38 = arith.maximumf %36, %37 : vector<8x128xf32>
    %39 = arith.index_cast %c1_i32 : i32 to index
    %c0_25 = arith.constant 0 : index
    %c0_26 = arith.constant 0 : index
    %40 = vector.load %arg8[%39, %c0_25, %c0_26] : memref<4x128x128xf32, #tpu.memory_space<vmem>>, vector<1x128x128xf32>
    %41 = vector.shape_cast %40 : vector<1x128x128xf32> to vector<128x128xf32>
    %42 = arith.mulf %5, %41 : vector<128x128xf32>
    %43 = arith.addf %4, %42 : vector<128x128xf32>
    %cst_27 = arith.constant dense<0.000000e+00> : vector<8x128xf32>
    %44 = tpu.matmul %38, %43, %cst_27 {dimension_numbers = #tpu.dot_dimension_numbers<[1], [0], [0], [1], [0, 0, 1, 1], [], []>} : vector<8x128xf32>, vector<128x128xf32>, vector<8x128xf32> -> vector<8x128xf32>
    %45 = vector.broadcast %6 : vector<1x128xf32> to vector<8x128xf32>
    %46 = arith.addf %44, %45 : vector<8x128xf32>
    %47 = arith.index_cast %c1_i32 : i32 to index
    %c0_28 = arith.constant 0 : index
    %c0_29 = arith.constant 0 : index
    %48 = vector.load %arg10[%47, %c0_28, %c0_29] : memref<4x8x128xf32, #tpu.memory_space<vmem>>, vector<1x8x128xf32>
    %49 = vector.shape_cast %48 : vector<1x8x128xf32> to vector<8x128xf32>
    %50 = vector.shape_cast %46 : vector<8x128xf32> to vector<1x8x128xf32>
    tpu.vector_store %arg10[%47, %c0_28, %c0_29], %50 {strides = array<i32>} : memref<4x8x128xf32, #tpu.memory_space<vmem>>, vector<1x8x128xf32>,
    %c2_i32 = arith.constant 2 : i32
    %51 = arith.index_cast %c2_i32 : i32 to index
    %c0_30 = arith.constant 0 : index
    %c0_31 = arith.constant 0 : index
    %52 = vector.load %arg4[%51, %c0_30, %c0_31] : memref<4x128x128xf32, #tpu.memory_space<vmem>>, vector<1x128x128xf32>
    %53 = vector.shape_cast %52 : vector<1x128x128xf32> to vector<128x128xf32>
    %54 = arith.mulf %2, %53 : vector<128x128xf32>
    %55 = arith.addf %1, %54 : vector<128x128xf32>
    %cst_32 = arith.constant dense<0.000000e+00> : vector<8x128xf32>
    %56 = tpu.matmul %0, %55, %cst_32 {dimension_numbers = #tpu.dot_dimension_numbers<[1], [0], [0], [1], [0, 0, 1, 1], [], []>} : vector<8x128xf32>, vector<128x128xf32>, vector<8x128xf32> -> vector<8x128xf32>
    %57 = vector.broadcast %3 : vector<1x128xf32> to vector<8x128xf32>
    %58 = arith.addf %56, %57 : vector<8x128xf32>
    %cst_33 = arith.constant 0.000000e+00 : f32
    %59 = vector.broadcast %cst_33 : f32 to vector<8x128xf32>
    %60 = arith.maximumf %58, %59 : vector<8x128xf32>
    %61 = arith.index_cast %c2_i32 : i32 to index
    %c0_34 = arith.constant 0 : index
    %c0_35 = arith.constant 0 : index
    %62 = vector.load %arg8[%61, %c0_34, %c0_35] : memref<4x128x128xf32, #tpu.memory_space<vmem>>, vector<1x128x128xf32>
    %63 = vector.shape_cast %62 : vector<1x128x128xf32> to vector<128x128xf32>
    %64 = arith.mulf %5, %63 : vector<128x128xf32>
    %65 = arith.addf %4, %64 : vector<128x128xf32>
    %cst_36 = arith.constant dense<0.000000e+00> : vector<8x128xf32>
    %66 = tpu.matmul %60, %65, %cst_36 {dimension_numbers = #tpu.dot_dimension_numbers<[1], [0], [0], [1], [0, 0, 1, 1], [], []>} : vector<8x128xf32>, vector<128x128xf32>, vector<8x128xf32> -> vector<8x128xf32>
    %67 = vector.broadcast %6 : vector<1x128xf32> to vector<8x128xf32>
    %68 = arith.addf %66, %67 : vector<8x128xf32>
    %69 = arith.index_cast %c2_i32 : i32 to index
    %c0_37 = arith.constant 0 : index
    %c0_38 = arith.constant 0 : index
    %70 = vector.load %arg10[%69, %c0_37, %c0_38] : memref<4x8x128xf32, #tpu.memory_space<vmem>>, vector<1x8x128xf32>
    %71 = vector.shape_cast %70 : vector<1x8x128xf32> to vector<8x128xf32>
    %72 = vector.shape_cast %68 : vector<8x128xf32> to vector<1x8x128xf32>
    tpu.vector_store %arg10[%69, %c0_37, %c0_38], %72 {strides = array<i32>} : memref<4x8x128xf32, #tpu.memory_space<vmem>>, vector<1x8x128xf32>,
    %c3_i32 = arith.constant 3 : i32
    %73 = arith.index_cast %c3_i32 : i32 to index
    %c0_39 = arith.constant 0 : index
    %c0_40 = arith.constant 0 : index
    %74 = vector.load %arg4[%73, %c0_39, %c0_40] : memref<4x128x128xf32, #tpu.memory_space<vmem>>, vector<1x128x128xf32>
    %75 = vector.shape_cast %74 : vector<1x128x128xf32> to vector<128x128xf32>
    %76 = arith.mulf %2, %75 : vector<128x128xf32>
    %77 = arith.addf %1, %76 : vector<128x128xf32>
    %cst_41 = arith.constant dense<0.000000e+00> : vector<8x128xf32>
    %78 = tpu.matmul %0, %77, %cst_41 {dimension_numbers = #tpu.dot_dimension_numbers<[1], [0], [0], [1], [0, 0, 1, 1], [], []>} : vector<8x128xf32>, vector<128x128xf32>, vector<8x128xf32> -> vector<8x128xf32>
    %79 = vector.broadcast %3 : vector<1x128xf32> to vector<8x128xf32>
    %80 = arith.addf %78, %79 : vector<8x128xf32>
    %cst_42 = arith.constant 0.000000e+00 : f32
    %81 = vector.broadcast %cst_42 : f32 to vector<8x128xf32>
    %82 = arith.maximumf %80, %81 : vector<8x128xf32>
    %83 = arith.index_cast %c3_i32 : i32 to index
    %c0_43 = arith.constant 0 : index
    %c0_44 = arith.constant 0 : index
    %84 = vector.load %arg8[%83, %c0_43, %c0_44] : memref<4x128x128xf32, #tpu.memory_space<vmem>>, vector<1x128x128xf32>
    %85 = vector.shape_cast %84 : vector<1x128x128xf32> to vector<128x128xf32>
    %86 = arith.mulf %5, %85 : vector<128x128xf32>
    %87 = arith.addf %4, %86 : vector<128x128xf32>
    %cst_45 = arith.constant dense<0.000000e+00> : vector<8x128xf32>
    %88 = tpu.matmul %82, %87, %cst_45 {dimension_numbers = #tpu.dot_dimension_numbers<[1], [0], [0], [1], [0, 0, 1, 1], [], []>} : vector<8x128xf32>, vector<128x128xf32>, vector<8x128xf32> -> vector<8x128xf32>
    %89 = vector.broadcast %6 : vector<1x128xf32> to vector<8x128xf32>
    %90 = arith.addf %88, %89 : vector<8x128xf32>
    %91 = arith.index_cast %c3_i32 : i32 to index
    %c0_46 = arith.constant 0 : index
    %c0_47 = arith.constant 0 : index
    %92 = vector.load %arg10[%91, %c0_46, %c0_47] : memref<4x8x128xf32, #tpu.memory_space<vmem>>, vector<1x8x128xf32>
    %93 = vector.shape_cast %92 : vector<1x8x128xf32> to vector<8x128xf32>
    %94 = vector.shape_cast %90 : vector<8x128xf32> to vector<1x8x128xf32>
    tpu.vector_store %arg10[%91, %c0_46, %c0_47], %94 {strides = array<i32>} : memref<4x8x128xf32, #tpu.memory_space<vmem>>, vector<1x8x128xf32>,
    %c4_i32 = arith.constant 4 : i32
    return
  }
  func.func @transform_0(%arg0: i32) -> (i32, i32) {
    %c0_i32 = arith.constant 0 : i32
    %c0_i32_0 = arith.constant 0 : i32
    %c0_i32_1 = arith.constant 0 : i32
    return %c0_i32, %c0_i32_0 : i32, i32
  }
  func.func @transform_1(%arg0: i32) -> (i32, i32) {
    %c0_i32 = arith.constant 0 : i32
    %c0_i32_0 = arith.constant 0 : i32
    %c0_i32_1 = arith.constant 0 : i32
    return %c0_i32, %c0_i32_0 : i32, i32
  }
  func.func @transform_2(%arg0: i32) -> (i32, i32) {
    %c0_i32 = arith.constant 0 : i32
    %c0_i32_0 = arith.constant 0 : i32
    %c0_i32_1 = arith.constant 0 : i32
    return %c0_i32, %c0_i32_0 : i32, i32
  }
  func.func @transform_3(%arg0: i32) -> (i32, i32, i32) {
    %c0_i32 = arith.constant 0 : i32
    %c0_i32_0 = arith.constant 0 : i32
    %c0_i32_1 = arith.constant 0 : i32
    return %arg0, %c0_i32, %c0_i32_0 : i32, i32, i32
  }
  func.func @transform_4(%arg0: i32) -> (i32, i32) {
    %c0_i32 = arith.constant 0 : i32
    %c0_i32_0 = arith.constant 0 : i32
    %c0_i32_1 = arith.constant 0 : i32
    return %c0_i32, %c0_i32_0 : i32, i32
  }
  func.func @transform_5(%arg0: i32) -> (i32, i32) {
    %c0_i32 = arith.constant 0 : i32
    %c0_i32_0 = arith.constant 0 : i32
    %c0_i32_1 = arith.constant 0 : i32
    return %c0_i32, %c0_i32_0 : i32, i32
  }
  func.func @transform_6(%arg0: i32) -> (i32, i32) {
    %c0_i32 = arith.constant 0 : i32
    %c0_i32_0 = arith.constant 0 : i32
    %c0_i32_1 = arith.constant 0 : i32
    return %c0_i32, %c0_i32_0 : i32, i32
  }
  func.func @transform_7(%arg0: i32) -> (i32, i32, i32) {
    %c0_i32 = arith.constant 0 : i32
    %c0_i32_0 = arith.constant 0 : i32
    %c0_i32_1 = arith.constant 0 : i32
    return %arg0, %c0_i32, %c0_i32_0 : i32, i32, i32
  }
  func.func @transform_8(%arg0: i32) -> (i32, i32) {
    %c0_i32 = arith.constant 0 : i32
    %c0_i32_0 = arith.constant 0 : i32
    %c0_i32_1 = arith.constant 0 : i32
    return %c0_i32, %c0_i32_0 : i32, i32
  }
  func.func @transform_9(%arg0: i32) -> (i32, i32, i32) {
    %c0_i32 = arith.constant 0 : i32
    %c0_i32_0 = arith.constant 0 : i32
    %c0_i32_1 = arith.constant 0 : i32
    return %arg0, %c0_i32, %c0_i32_0 : i32, i32, i32
  }
}

</mosaic_0001>

<bundles_post_ra>
// kernel: tpu_custom_call.1
= control target key start
LH: loop header
LB: loop body
LE: loop exit
PB: predicated region body
PF: predicated region fallthrough
CT: control target
= control target key end

     0   :  { %14 = vsyncpa [#allocation3], 0  ;;  %s2864_s0 = inlined_call_operand.hbm [shape: f32[8,128], index: 0, kind: input, shape index: {}]   ;;  %s2865_s1 = inlined_call_operand.hbm [shape: f32[128,128], index: 1, kind: input, shape index: {}]   ;;  %s2866_s2 = inlined_call_operand.hbm [shape: f32[128,128], index: 2, kind: input, shape index: {}]   ;;  %s2867_s3 = inlined_call_operand.hbm [shape: f32[4,128,128], index: 3, kind: input, shape index: {}]   ;;  %s2868_s4 = inlined_call_operand.vmem [shape: f32[1,128], index: 4, kind: input, shape index: {}]   ;;  %s2869_s5 = inlined_call_operand.hbm [shape: f32[128,128], index: 5, kind: input, shape index: {}]   ;;  %s2870_s6 = inlined_call_operand.hbm [shape: f32[128,128], index: 6, kind: input, shape index: {}]   ;;  %s2871_s7 = inlined_call_operand.hbm [shape: f32[4,128,128], index: 7, kind: input, shape index: {}]   ;;  %s2872_s8 = inlined_call_operand.vmem [shape: f32[1,128], index: 8, kind: input, shape index: {}]   ;;  %s2873_s9 = inlined_call_operand.hbm [shape: f32[4,8,128], index: 9, kind: output, shape index: {}]  }
   0x1   :  { %15 = vsyncpa [#allocation6], 0 }
   0x2   :  { %16 = vsyncpa [#allocation9], 0 }
   0x3   :  { %17 = vsyncpa [#allocation12], 0 }
   0x4   :  { %18 = vsyncpa [#allocation4], 0  ;;  %s1995_s30 = smov [#allocation5]   ;;  %s1809_s13 = scalar_lea.hbm %s2865_s1, 2048 }
   0x5   :  { %s34_s10 = sshll.u32 %s1995_s30, 4  ;;  %p1810_p0 = scmp.ne.s32.totalorder %s2865_s1, %s1809_s13  ;;  %s35_s10 = int_to_ptr.vmem [resolvable:$true] %s34_s10 }
   0x6   :  { %p1813_p1 = scmp.lt.u32.totalorder %s1809_s13, %s2865_s1 }
   0x8   :  { %p1815_p2 = pnand %p1813_p1, %p1810_p0 }
   0xa   :  { %1818 = shalt.err (!%p1815_p2)
}
   0xb   :  { %s1819_s18 = scalar_lea.vmem %s35_s10, 2048  ;;  %p1824_p4 = scmp.lt.s32.totalorder %s35_s10, %s35_s10 }
   0xc   :  { %p1820_p3 = scmp.ne.s32.totalorder %s35_s10, %s1819_s18  ;;  %p1825_p5 = scmp.lt.s32.totalorder %s1819_s18, %s1819_s18 }
   0xe   :  { %p1826_p6 = por %p1825_p5, %p1824_p4 }
  0x10   :  { %p1827_p7 = pnand %p1826_p6, %p1820_p3 }
  0x12   :  { %1830 = shalt.err (!%p1827_p7)
}
  0x13   :  { %s1996_s19 = smov 128   ;;  %s1997_s20 = smov 8  }
  0x14   :  { %40 = dma.hbm_to_vmem [thread:$0]  %s2865_s1, 2048, %s35_s10, [#allocation6], %s1996_s19, %s1996_s19, %s1997_s20  }
  0x15   :  { %s1998_s23 = smov [#allocation8]   ;;  %s1999_s25 = smov [#allocation11]  }
  0x16   :  { %s58_s24 = sshll.u32 %s1998_s23, 4  ;;  %s84_s26 = sshll.u32 %s1999_s25, 4  ;;  %s59_s24 = int_to_ptr.vmem [resolvable:$true] %s58_s24  ;;  %s85_s26 = int_to_ptr.vmem [resolvable:$true] %s84_s26 }
  0x17   :  { %s1831_s29 = scalar_lea.hbm %s2867_s3, 8192 }
  0x18   :  { %p1832_p8 = scmp.ne.s32.totalorder %s2867_s3, %s1831_s29  ;;  %p1835_p9 = scmp.lt.u32.totalorder %s1831_s29, %s2867_s3 }
  0x1a   :  { %p1837_p10 = pnand %p1835_p9, %p1832_p8 }
  0x1c   :  { %1840 = shalt.err (!%p1837_p10)
}
  0x1d   :  { %s1841_s1 = scalar_lea.vmem %s59_s24, 8192  ;;  %p1846_p12 = scmp.lt.s32.totalorder %s59_s24, %s59_s24 }
  0x1e   :  { %p1842_p11 = scmp.ne.s32.totalorder %s59_s24, %s1841_s1  ;;  %p1847_p13 = scmp.lt.s32.totalorder %s1841_s1, %s1841_s1 }
  0x20   :  { %p1848_p0 = por %p1847_p13, %p1846_p12 }
  0x22   :  { %p1849_p1 = pnand %p1848_p0, %p1842_p11 }
  0x24   :  { %1852 = shalt.err (!%p1849_p1)
}
  0x25   :  { %64 = dma.hbm_to_vmem [thread:$0]  %s2867_s3, 8192, %s59_s24, [#allocation9], %s1996_s19, %s1996_s19, %s1997_s20  }
  0x26   :  { %s1853_s17 = scalar_lea.hbm %s2870_s6, 2048 }
  0x27   :  { %p1854_p2 = scmp.ne.s32.totalorder %s2870_s6, %s1853_s17  ;;  %p1857_p3 = scmp.lt.u32.totalorder %s1853_s17, %s2870_s6 }
  0x29   :  { %p1859_p4 = pnand %p1857_p3, %p1854_p2 }
  0x2b   :  { %1862 = shalt.err (!%p1859_p4)
}
  0x2c   :  { %s1863_s25 = scalar_lea.vmem %s85_s26, 2048  ;;  %p1868_p6 = scmp.lt.s32.totalorder %s85_s26, %s85_s26 }
  0x2d   :  { %p1864_p5 = scmp.ne.s32.totalorder %s85_s26, %s1863_s25  ;;  %p1869_p7 = scmp.lt.s32.totalorder %s1863_s25, %s1863_s25 }
  0x2f   :  { %p1870_p8 = por %p1869_p7, %p1868_p6 }
  0x31   :  { %p1871_p9 = pnand %p1870_p8, %p1864_p5 }
  0x33   :  { %1874 = shalt.err (!%p1871_p9)
}
  0x34   :  { %90 = dma.hbm_to_vmem [thread:$0]  %s2870_s6, 2048, %s85_s26, [#allocation12], %s1996_s19, %s1996_s19, %s1997_s20  }
  0x35   :  { %s2000_s27 = smov [#allocation2]   ;;  %s2001_s29 = smov [#allocation7]  }
  0x36   :  { %s25_s28 = sshll.u32 %s2000_s27, 4  ;;  %s46_s30 = sshll.u32 %s2001_s29, 4  ;;  %s26_s28 = int_to_ptr.vmem [resolvable:$true] %s25_s28  ;;  %s47_s30 = int_to_ptr.vmem [resolvable:$true] %s46_s30 }
  0x37   :  { %s1875_s13 = scalar_lea.hbm %s2864_s0, 128 }
  0x38   :  { %p1876_p10 = scmp.ne.s32.totalorder %s2864_s0, %s1875_s13  ;;  %p1879_p11 = scmp.lt.u32.totalorder %s1875_s13, %s2864_s0 }
  0x3a   :  { %p1881_p12 = pnand %p1879_p11, %p1876_p10 }
  0x3c   :  { %1884 = shalt.err (!%p1881_p12)
}
  0x3d   :  { %s1885_s6 = scalar_lea.vmem %s26_s28, 128  ;;  %p1890_p0 = scmp.lt.s32.totalorder %s26_s28, %s26_s28 }
  0x3e   :  { %p1886_p13 = scmp.ne.s32.totalorder %s26_s28, %s1885_s6  ;;  %p1891_p1 = scmp.lt.s32.totalorder %s1885_s6, %s1885_s6 }
  0x40   :  { %p1892_p2 = por %p1891_p1, %p1890_p0 }
  0x42   :  { %p1893_p3 = pnand %p1892_p2, %p1886_p13 }
  0x44   :  { %1896 = shalt.err (!%p1893_p3)
}
  0x45   :  { %28 = dma.hbm_to_vmem [thread:$0]  %s2864_s0, 128, %s26_s28, [#allocation3]  }
  0x46   :  { %s1897_s21 = scalar_lea.hbm %s2866_s2, 2048 }
  0x47   :  { %p1898_p4 = scmp.ne.s32.totalorder %s2866_s2, %s1897_s21  ;;  %p1901_p5 = scmp.lt.u32.totalorder %s1897_s21, %s2866_s2 }
  0x49   :  { %p1903_p6 = pnand %p1901_p5, %p1898_p4 }
  0x4b   :  { %1906 = shalt.err (!%p1903_p6)
}
  0x4c   :  { %s1907_s24 = scalar_lea.vmem %s47_s30, 2048  ;;  %p1912_p8 = scmp.lt.s32.totalorder %s47_s30, %s47_s30 }
  0x4d   :  { %p1908_p7 = scmp.ne.s32.totalorder %s47_s30, %s1907_s24  ;;  %p1913_p9 = scmp.lt.s32.totalorder %s1907_s24, %s1907_s24 }
  0x4f   :  { %p1914_p10 = por %p1913_p9, %p1912_p8 }
  0x51   :  { %p1915_p11 = pnand %p1914_p10, %p1908_p7 }
  0x53   :  { %1918 = shalt.err (!%p1915_p11)
}
  0x54   :  { %52 = dma.hbm_to_vmem [thread:$0]  %s2866_s2, 2048, %s47_s30, [#allocation6], %s1996_s19, %s1996_s19, %s1997_s20  }
  0x55   :  { %s2002_s28 = smov [#allocation10]   ;;  %s2003_s11 = smov [#allocation13]  }
  0x56   :  { %s72_s29 = sshll.u32 %s2002_s28, 4  ;;  %s96_s12 = sshll.u32 %s2003_s11, 4  ;;  %s73_s29 = int_to_ptr.vmem [resolvable:$true] %s72_s29  ;;  %s97_s12 = int_to_ptr.vmem [resolvable:$true] %s96_s12 }
  0x57   :  { %s1919_s10 = scalar_lea.hbm %s2869_s5, 2048 }
  0x58   :  { %p1920_p12 = scmp.ne.s32.totalorder %s2869_s5, %s1919_s10  ;;  %p1923_p13 = scmp.lt.u32.totalorder %s1919_s10, %s2869_s5 }
  0x5a   :  { %p1925_p0 = pnand %p1923_p13, %p1920_p12 }
  0x5c   :  { %1928 = shalt.err (!%p1925_p0)
}
  0x5d   :  { %s1929_s2 = scalar_lea.vmem %s73_s29, 2048  ;;  %p1934_p2 = scmp.lt.s32.totalorder %s73_s29, %s73_s29 }
  0x5e   :  { %p1930_p1 = scmp.ne.s32.totalorder %s73_s29, %s1929_s2  ;;  %p1935_p3 = scmp.lt.s32.totalorder %s1929_s2, %s1929_s2 }
  0x60   :  { %p1936_p4 = por %p1935_p3, %p1934_p2 }
  0x62   :  { %p1937_p5 = pnand %p1936_p4, %p1930_p1 }
  0x64   :  { %1940 = shalt.err (!%p1937_p5)
}
  0x65   :  { %78 = dma.hbm_to_vmem [thread:$0]  %s2869_s5, 2048, %s73_s29, [#allocation9], %s1996_s19, %s1996_s19, %s1997_s20  }
  0x66   :  { %s1941_s21 = scalar_lea.hbm %s2871_s7, 8192 }
  0x67   :  { %p1942_p6 = scmp.ne.s32.totalorder %s2871_s7, %s1941_s21  ;;  %p1945_p7 = scmp.lt.u32.totalorder %s1941_s21, %s2871_s7 }
  0x69   :  { %p1947_p8 = pnand %p1945_p7, %p1942_p6 }
  0x6b   :  { %1950 = shalt.err (!%p1947_p8)
}
  0x6c   :  { %s1951_s24 = scalar_lea.vmem %s97_s12, 8192  ;;  %p1956_p10 = scmp.lt.s32.totalorder %s97_s12, %s97_s12 }
  0x6d   :  { %p1952_p9 = scmp.ne.s32.totalorder %s97_s12, %s1951_s24  ;;  %p1957_p11 = scmp.lt.s32.totalorder %s1951_s24, %s1951_s24 }
  0x6f   :  { %p1958_p12 = por %p1957_p11, %p1956_p10 }
  0x71   :  { %p1959_p13 = pnand %p1958_p12, %p1952_p9 }
  0x73   :  { %1962 = shalt.err (!%p1959_p13)
}
  0x74   :  { %102 = dma.hbm_to_vmem [thread:$0]  %s2871_s7, 8192, %s97_s12, [#allocation12], %s1996_s19, %s1996_s19, %s1997_s20  }
  0x75   :  { %1985 = dma.done.wait [#allocation3], 128  }
  0x76   :  { %1986 = vsyncadd [#allocation3], 4294967168 }
  0x77   :  { %1987 = dma.done.wait [#allocation6], 4096  }
  0x78   :  { %1988 = vsyncadd [#allocation6], 4294963200 }
  0x79   :  { %1989 = dma.done.wait [#allocation9], 10240  }
  0x7a   :  { %1990 = vsyncadd [#allocation9], 4294957056 }
  0x7b   :  { %1991 = dma.done.wait [#allocation12], 10240  }
  0x7c   :  { %1992 = vsyncadd [#allocation12], 4294957056  ;;  %v2876_v0 = vmov 0.0|0.0   ;;  %vm2005_vm0 = vmmov 0   ;;  %v2874_v1 = vmov 0.0   ;;  %v2166_v2 = vld [vmem:[#allocation5] sm:$0xff] }
  0x7d   :  { %1604 = vmatprep.subr.bf16.mxu0 %v2876_v0  ;;  %1356 = vmatprep.mubr.msk.f32.mxu0 %vm2005_vm0, %v2874_v1  ;;  %v2168_v3 = vld [vmem:[#allocation5 + $0x8] sm:$0xff]  ;;  %v2170_v4 = vld [vmem:[#allocation7] sm:$0xff]  ;;  %v2176_v10 = vld [vmem:[#allocation5 + $0x10] sm:$0xff]  ;;  %s2007_s29 = smov [#allocation14]  }
  0x7e   :  { %1628 = vmatprep.subr.bf16.mxu1 %v2876_v0  ;;  %1391 = vmatprep.mubr.msk.f32.mxu1 %vm2005_vm0, %v2874_v1  ;;  %v2172_v5 = vld [vmem:[#allocation7 + $0x8] sm:$0xff]  ;;  %v193_v6 = vld [vmem:[#allocation8] sm:$0xff]  ;;  %v2178_v11 = vld [vmem:[#allocation5 + $0x18] sm:$0xff]  ;;  %s1171_s11 = sshll.u32 %s2007_s29, 4  ;;  %s1172_s11 = int_to_ptr.vmem [resolvable:$true] %s1171_s11 }
  0x7f   :  { %v194_v7 = vld [vmem:[#allocation8 + $0x8] sm:$0xff]  ;;  %v209_v8 = vmul.f32 %v193_v6, %v2170_v4  ;;  %v2180_v12 = vld [vmem:[#allocation7 + $0x10] sm:$0xff]  ;;  %v2182_v13 = vld [vmem:[#allocation7 + $0x18] sm:$0xff]  ;;  %p1968_p1 = scmp.lt.s32.totalorder %s1172_s11, %s1172_s11 }
  0x80   :  { %v210_v9 = vmul.f32 %v194_v7, %v2172_v5  ;;  %v195_v14 = vld [vmem:[#allocation8 + $0x10] sm:$0xff]  ;;  %v196_v15 = vld [vmem:[#allocation8 + $0x18] sm:$0xff]  ;;  %v2188_v20 = vld [vmem:[#allocation5 + $0x20] sm:$0xff] }
  0x81   :  { %v225_v16 = vadd.f32 %v209_v8, %v2166_v2  ;;  %v211_v18 = vmul.f32 %v195_v14, %v2180_v12  ;;  %v212_v19 = vmul.f32 %v196_v15, %v2182_v13  ;;  %v2190_v21 = vld [vmem:[#allocation7 + $0x20] sm:$0xff]  ;;  %v2192_v22 = vld [vmem:[#allocation7 + $0x28] sm:$0xff]  ;;  %v2199_v30 = vld [vmem:[#allocation7 + $0x30] sm:$0xff] }
  0x82   :  { %v226_v17 = vadd.f32 %v210_v9, %v2168_v3  ;;  %v197_v23 = vld [vmem:[#allocation8 + $0x20] sm:$0xff]  ;;  %v198_v24 = vld [vmem:[#allocation8 + $0x28] sm:$0xff]  ;;  %v2202_v32 = vld [vmem:[#allocation7 + $0x38] sm:$0xff] }
  0x83   :  { %v227_v26 = vadd.f32 %v211_v18, %v2176_v10  ;;  %v228_v27 = vadd.f32 %v212_v19, %v2178_v11  ;;  %v2196_v28 = vld [vmem:[#allocation5 + $0x28] sm:$0xff]  ;;  %v213_v29 = vmul.f32 %v197_v23, %v2190_v21  ;;  %v214_v31 = vmul.f32 %v198_v24, %v2192_v22  ;;  %v199_v33 = vld [vmem:[#allocation8 + $0x30] sm:$0xff]  ;;  %v200_v34 = vld [vmem:[#allocation8 + $0x38] sm:$0xff] }
  0x84   :  { %v1605_v25 = vpack.c.bf16 %v226_v17, %v225_v16  ;;  %v2205_v37 = vld [vmem:[#allocation5 + $0x30] sm:$0xff]  ;;  %v2207_v38 = vld [vmem:[#allocation5 + $0x38] sm:$0xff]  ;;  %v215_v39 = vmul.f32 %v199_v33, %v2199_v30  ;;  %v216_v40 = vmul.f32 %v200_v34, %v2202_v32  ;;  %v2211_v41 = vld [vmem:[#allocation7 + $0x40] sm:$0xff] }
  0x85   :  { %v1608_v35 = vpack.c.bf16 %v228_v27, %v227_v26  ;;  %v229_v36 = vadd.f32 %v213_v29, %v2188_v20  ;;  %v230_v42 = vadd.f32 %v214_v31, %v2196_v28  ;;  %v2215_v43 = vld [vmem:[#allocation7 + $0x48] sm:$0xff]  ;;  %v201_v44 = vld [vmem:[#allocation8 + $0x40] sm:$0xff]  ;;  %v2223_v50 = vld [vmem:[#allocation7 + $0x50] sm:$0xff] }
  0x86   :  { %1606 = vmatpush3.bf16.msra.mxu0 %v1605_v25  ;;  %v202_v45 = vld [vmem:[#allocation8 + $0x48] sm:$0xff]  ;;  %v2217_v46 = vld [vmem:[#allocation5 + $0x40] sm:$0xff]  ;;  %v217_v48 = vmul.f32 %v201_v44, %v2211_v41  ;;  %v2225_v51 = vld [vmem:[#allocation7 + $0x58] sm:$0xff]  ;;  %v231_v53 = vadd.f32 %v215_v39, %v2205_v37  ;;  %v232_v54 = vadd.f32 %v216_v40, %v2207_v38 }
  0x87   :  { %1607 = vmatprep.subr.bf16.mxu0 %v2876_v0  ;;  %v2219_v47 = vld [vmem:[#allocation5 + $0x48] sm:$0xff]  ;;  %v218_v49 = vmul.f32 %v202_v45, %v2215_v43  ;;  %v1611_v52 = vpack.c.bf16 %v230_v42, %v229_v36  ;;  %v203_v55 = vld [vmem:[#allocation8 + $0x50] sm:$0xff]  ;;  %v204_v56 = vld [vmem:[#allocation8 + $0x58] sm:$0xff] }
  0x88   :  { %v2229_v57 = vld [vmem:[#allocation7 + $0x60] sm:$0xff]  ;;  %v2232_v58 = vld [vmem:[#allocation7 + $0x68] sm:$0xff]  ;;  %v2234_v61 = vld [vmem:[#allocation5 + $0x50] sm:$0xff]  ;;  %v233_v6 = vadd.f32 %v217_v48, %v2217_v46  ;;  %v219_v8 = vmul.f32 %v203_v55, %v2223_v50  ;;  %v220_v9 = vmul.f32 %v204_v56, %v2225_v51  ;;  %v1614_v18 = vpack.c.bf16 %v232_v54, %v231_v53 }
  0x89   :  { %v205_v59 = vld [vmem:[#allocation8 + $0x60] sm:$0xff]  ;;  %v206_v60 = vld [vmem:[#allocation8 + $0x68] sm:$0xff]  ;;  %v2236_v62 = vld [vmem:[#allocation5 + $0x58] sm:$0xff]  ;;  %v234_v7 = vadd.f32 %v218_v49, %v2219_v47 }
  0x8a   :  { %1609 = vmatpush3.bf16.msra.mxu0 %v1608_v35  ;;  %v2238_v63 = vld [vmem:[#allocation7 + $0x70] sm:$0xff]  ;;  %v2244_v14 = vld [vmem:[#allocation5 + $0x60] sm:$0xff]  ;;  %v2246_v15 = vld [vmem:[#allocation7 + $0x78] sm:$0xff]  ;;  %v221_v23 = vmul.f32 %v205_v59, %v2229_v57  ;;  %v222_v24 = vmul.f32 %v206_v60, %v2232_v58  ;;  %v235_v48 = vadd.f32 %v219_v8, %v2234_v61  ;;  %v236_v49 = vadd.f32 %v220_v9, %v2236_v62 }
  0x8b   :  { %1610 = vmatprep.subr.bf16.mxu0 %v2876_v0  ;;  %v207_v16 = vld [vmem:[#allocation8 + $0x70] sm:$0xff]  ;;  %v208_v17 = vld [vmem:[#allocation8 + $0x78] sm:$0xff]  ;;  %v2248_v19 = vld [vmem:[#allocation5 + $0x68] sm:$0xff]  ;;  %v1617_v45 = vpack.c.bf16 %v234_v7, %v233_v6 }
  0x8c   :  { %v444_v25 = vld [vmem:[#allocation8 + $0x80] sm:$0xff]  ;;  %v445_v26 = vld [vmem:[#allocation8 + $0x88] sm:$0xff]  ;;  %v223_v27 = vmul.f32 %v207_v16, %v2238_v63  ;;  %v224_v29 = vmul.f32 %v208_v17, %v2246_v15  ;;  %v446_v34 = vld [vmem:[#allocation8 + $0x90] sm:$0xff]  ;;  %v2266_v55 = vadd.f32 %v221_v23, %v2244_v14  ;;  %v2269_v56 = vadd.f32 %v222_v24, %v2248_v19 }
  0x8d   :  { %v460_v31 = vmul.f32 %v444_v25, %v2170_v4  ;;  %v461_v33 = vmul.f32 %v445_v26, %v2172_v5  ;;  %v447_v35 = vld [vmem:[#allocation8 + $0x98] sm:$0xff]  ;;  %v448_v36 = vld [vmem:[#allocation8 + $0xa0] sm:$0xff]  ;;  %v2257_v39 = vld [vmem:[#allocation5 + $0x70] sm:$0xff]  ;;  %v462_v42 = vmul.f32 %v446_v34, %v2180_v12 }
  0x8e   :  { %1612 = vmatpush3.bf16.msra.mxu0 %v1611_v52  ;;  %v2259_v40 = vld [vmem:[#allocation5 + $0x78] sm:$0xff]  ;;  %v449_v44 = vld [vmem:[#allocation8 + $0xa8] sm:$0xff]  ;;  %v463_v52 = vmul.f32 %v447_v35, %v2182_v13  ;;  %v450_v53 = vld [vmem:[#allocation8 + $0xb0] sm:$0xff]  ;;  %v464_v59 = vmul.f32 %v448_v36, %v2190_v21  ;;  %v2275_v6 = vadd.f32 %v223_v27, %v2257_v39  ;;  %v1620_v27 = vpack.c.bf16 %v236_v49, %v235_v48 }
  0x8f   :  { %1613 = vmatprep.subr.bf16.mxu0 %v2876_v0  ;;  %v451_v54 = vld [vmem:[#allocation8 + $0xb8] sm:$0xff]  ;;  %v465_v60 = vmul.f32 %v449_v44, %v2192_v22  ;;  %v2278_v7 = vadd.f32 %v224_v29, %v2259_v40  ;;  %v2281_v8 = vadd.f32 %v460_v31, %v2166_v2  ;;  %v2284_v9 = vadd.f32 %v461_v33, %v2168_v3  ;;  %v452_v16 = vld [vmem:[#allocation8 + $0xc0] sm:$0xff]  ;;  %v453_v25 = vld [vmem:[#allocation8 + $0xc8] sm:$0xff] }
  0x90   :  { %v2287_v17 = vadd.f32 %v462_v42, %v2176_v10  ;;  %v466_v23 = vmul.f32 %v450_v53, %v2199_v30  ;;  %v467_v24 = vmul.f32 %v451_v54, %v2202_v32  ;;  %v454_v26 = vld [vmem:[#allocation8 + $0xd0] sm:$0xff]  ;;  %v2295_v29 = vadd.f32 %v464_v59, %v2188_v20  ;;  %v455_v34 = vld [vmem:[#allocation8 + $0xd8] sm:$0xff]  ;;  %v685_v35 = vld [vmem:[#allocation8 + $0x100] sm:$0xff] }
  0x91   :  { %v2298_v31 = vadd.f32 %v465_v60, %v2196_v28  ;;  %v468_v33 = vmul.f32 %v452_v16, %v2211_v41  ;;  %v686_v36 = vld [vmem:[#allocation8 + $0x108] sm:$0xff]  ;;  %v1623_v42 = vpack.c.bf16 %v2269_v56, %v2266_v55  ;;  %v687_v48 = vld [vmem:[#allocation8 + $0x110] sm:$0xff]  ;;  %v688_v49 = vld [vmem:[#allocation8 + $0x118] sm:$0xff]  ;;  %v2318_v56 = vmul.f32 %v454_v26, %v2223_v50 }
  0x92   :  { %1615 = vmatpush3.bf16.msra.mxu0 %v1614_v18  ;;  %v2290_v18 = vadd.f32 %v463_v52, %v2178_v11  ;;  %v2312_v54 = vadd.f32 %v466_v23, %v2205_v37  ;;  %v2315_v59 = vadd.f32 %v467_v24, %v2207_v38  ;;  %v689_v55 = vld [vmem:[#allocation8 + $0x120] sm:$0xff]  ;;  %v2321_v60 = vmul.f32 %v455_v34, %v2225_v51  ;;  %v690_v1 = vld [vmem:[#allocation8 + $0x128] sm:$0xff]  ;;  %v691_v52 = vld [vmem:[#allocation8 + $0x130] sm:$0xff] }
  0x93   :  { %1616 = vmatprep.subr.bf16.mxu0 %v2876_v0  ;;  %v701_v16 = vmul.f32 %v685_v35, %v2170_v4  ;;  %v2328_v53 = vadd.f32 %v468_v33, %v2217_v46  ;;  %v703_v24 = vmul.f32 %v687_v48, %v2180_v12  ;;  %v704_v26 = vmul.f32 %v688_v49, %v2182_v13  ;;  %v692_v44 = vld [vmem:[#allocation8 + $0x138] sm:$0xff]  ;;  %v694_v23 = vld [vmem:[#allocation8 + $0x148] sm:$0xff] }
  0x94   :  { %2906 = vst [vmem:[#allocation20_spill] sm:$0xff] %v2312_v54  ;;  %2907 = vst [vmem:[#allocation21_spill] sm:$0xff] %v2321_v60  ;;  %v705_v33 = vmul.f32 %v689_v55, %v2190_v21  ;;  %v696_v60 = vld [vmem:[#allocation8 + $0x158] sm:$0xff]  ;;  %v708_v48 = vmul.f32 %v692_v44, %v2202_v32  ;;  %v710_v54 = vmul.f32 %v694_v23, %v2215_v43 }
  0x95   :  { %2908 = vst [vmem:[#allocation22_spill] sm:$0xff] %v2328_v53  ;;  %v2337_v35 = vadd.f32 %v701_v16, %v2166_v2  ;;  %v2346_v49 = vadd.f32 %v703_v24, %v2176_v10  ;;  %v695_v16 = vld [vmem:[#allocation8 + $0x150] sm:$0xff]  ;;  %v697_v53 = vld [vmem:[#allocation8 + $0x160] sm:$0xff] }
  0x96   :  { %1618 = vmatpush3.bf16.msra.mxu0 %v1617_v45  ;;  %v469_v45 = vmul.f32 %v453_v25, %v2215_v43  ;;  %v702_v25 = vmul.f32 %v686_v36, %v2172_v5  ;;  %v693_v36 = vld [vmem:[#allocation8 + $0x140] sm:$0xff]  ;;  %v2355_v55 = vadd.f32 %v705_v33, %v2188_v20  ;;  %v2371_v44 = vadd.f32 %v708_v48, %v2207_v38  ;;  %v699_v24 = vld [vmem:[#allocation8 + $0x170] sm:$0xff]  ;;  %v927_v48 = vld [vmem:[#allocation8 + $0x188] sm:$0xff] }
  0x97   :  { %1619 = vmatprep.subr.bf16.mxu0 %v2876_v0  ;;  %2910 = vst [vmem:[#allocation24_spill] sm:$0xff] %v2337_v35  ;;  %2912 = vst [vmem:[#allocation26_spill] sm:$0xff] %v2346_v49  ;;  %v2916_v35 = vmov 0.0|0.0   ;;  %v2381_v49 = vadd.f32 %v710_v54, %v2219_v47  ;;  %v2920_v54 = vpack.c.bf16 %v2278_v7, %v2275_v6 }
  0x98   :  { %v2334_v34 = vadd.f32 %v469_v45, %v2219_v47  ;;  %v706_v45 = vmul.f32 %v690_v1, %v2192_v22  ;;  %2914 = vst [vmem:[#allocation28_spill] sm:$0xff] %v2355_v55  ;;  %v709_v1 = vmul.f32 %v693_v36, %v2211_v41  ;;  %v929_v55 = vld [vmem:[#allocation8 + $0x198] sm:$0xff] }
  0x99   :  { %2919 = vst [vmem:[#allocation32_spill] sm:$0xff] %v2381_v49  ;;  %v932_v49 = vld [vmem:[#allocation8 + $0x1b0] sm:$0xff] }
  0x9a   :  { %1621 = vmatpush3.bf16.msra.mxu0 %v1620_v27  ;;  %2909 = vst [vmem:[#allocation23_spill] sm:$0xff] %v2334_v34  ;;  %v2340_v27 = vadd.f32 %v702_v25, %v2168_v3  ;;  %v707_v34 = vmul.f32 %v691_v52, %v2199_v30  ;;  %v698_v25 = vld [vmem:[#allocation8 + $0x168] sm:$0xff]  ;;  %v712_v52 = vmul.f32 %v696_v60, %v2225_v51 }
  0x9b   :  { %1622 = vmatprep.subr.bf16.mxu0 %v2876_v0  ;;  %v2349_v0 = vadd.f32 %v704_v26, %v2178_v11  ;;  %v2362_v26 = vadd.f32 %v706_v45, %v2196_v28  ;;  %v700_v45 = vld [vmem:[#allocation8 + $0x178] sm:$0xff]  ;;  %v2378_v23 = vadd.f32 %v709_v1, %v2217_v46  ;;  %v714_v36 = vmul.f32 %v698_v25, %v2232_v58  ;;  %v928_v1 = vld [vmem:[#allocation8 + $0x190] sm:$0xff] }
  0x9c   :  { %2911 = vst [vmem:[#allocation25_spill] sm:$0xff] %v2340_v27  ;;  %v2368_v33 = vadd.f32 %v707_v34, %v2205_v37  ;;  %v713_v34 = vmul.f32 %v697_v53, %v2229_v57  ;;  %v2390_v27 = vadd.f32 %v712_v52, %v2236_v62  ;;  %v2396_v53 = vld [vmem:[#allocation2] sm:$0xff]  ;;  %v716_v52 = vmul.f32 %v700_v45, %v2246_v15  ;;  %v2548_v25 = vld [vmem:[#allocation11 + $0x30] sm:$0xff] }
  0x9d   :  { %2913 = vst [vmem:[#allocation27_spill] sm:$0xff] %v2349_v0  ;;  %2915 = vst [vmem:[#allocation29_spill] sm:$0xff] %v2362_v26  ;;  %v926_v0 = vld [vmem:[#allocation8 + $0x180] sm:$0xff]  ;;  %v2409_v6 = vadd.f32 %v714_v36, %v2248_v19  ;;  %v944_v45 = vmul.f32 %v928_v1, %v2180_v12  ;;  %v945_v26 = vmul.f32 %v929_v55, %v2182_v13  ;;  %v935_v12 = vld [vmem:[#allocation8 + $0x1c8] sm:$0xff]  ;;  %v2922_v55 = vmov 0.0  }
  0x9e   :  { %1624 = vmatpush3.bf16.msra.mxu0 %v1623_v42  ;;  %2917 = vst [vmem:[#allocation30_spill] sm:$0xff] %v2368_v33  ;;  %v711_v42 = vmul.f32 %v695_v16, %v2223_v50  ;;  %2918 = vst [vmem:[#allocation31_spill] sm:$0xff] %v2378_v23  ;;  %v2401_v16 = vadd.f32 %v713_v34, %v2244_v14  ;;  %v930_v33 = vld [vmem:[#allocation8 + $0x1a0] sm:$0xff]  ;;  %v942_v7 = vmul.f32 %v926_v0, %v2170_v4  ;;  %v931_v23 = vld [vmem:[#allocation8 + $0x1a8] sm:$0xff] }
  0x9f   :  { %1625 = vmatprep.subr.bf16.mxu0 %v2916_v35  ;;  %v2921_v13 = vpack.c.bf16 %v2284_v9, %v2281_v8  ;;  %v947_v9 = vmul.f32 %v931_v23, %v2192_v22  ;;  %v940_v1 = vld [vmem:[#allocation8 + $0x1f0] sm:$0xff]  ;;  %v2465_v23 = vld [vmem:[#allocation11] sm:$0xff] }
  0xa0   :  { %v2387_v60 = vadd.f32 %v711_v42, %v2234_v61  ;;  %v715_v42 = vmul.f32 %v699_v24, %v2238_v63  ;;  %v2417_v24 = vadd.f32 %v716_v52, %v2259_v40  ;;  %v2425_v0 = vadd.f32 %v942_v7, %v2166_v2  ;;  %2923 = vst [vmem:[#allocation33_spill] sm:$0xff] %v2465_v23 }
  0xa1   :  { %v2439_v2 = vadd.f32 %v944_v45, %v2176_v10  ;;  %v948_v7 = vmul.f32 %v932_v49, %v2199_v30  ;;  %v951_v45 = vmul.f32 %v935_v12, %v2215_v43  ;;  %v2458_v8 = vadd.f32 %v947_v9, %v2196_v28  ;;  %v941_v49 = vld [vmem:[#allocation8 + $0x1f8] sm:$0xff]  ;;  %v456_v10 = vld [vmem:[#allocation8 + $0xe0] sm:$0xff] }
  0xa2   :  { %1627 = vmatpush3.bf16.msra.mxu0 %v2920_v54  ;;  %v943_v54 = vmul.f32 %v927_v48, %v2172_v5  ;;  %v2414_v34 = vadd.f32 %v715_v42, %v2257_v39  ;;  %v946_v5 = vmul.f32 %v930_v33, %v2190_v21  ;;  %v933_v48 = vld [vmem:[#allocation8 + $0x1b8] sm:$0xff]  ;;  %v934_v42 = vld [vmem:[#allocation8 + $0x1c0] sm:$0xff]  ;;  %v936_v21 = vld [vmem:[#allocation8 + $0x1d0] sm:$0xff] }
  0xa3   :  { %1652 = vmatprep.subr.bf16.mxu0 %v2916_v35  ;;  %v937_v33 = vld [vmem:[#allocation8 + $0x1d8] sm:$0xff]  ;;  %v952_v22 = vmul.f32 %v936_v21, %v2223_v50  ;;  %v320_v21 = vld [vmem:[#allocation13 + $0x10] sm:$0xff] }
  0xa4   :  { %v2428_v4 = vadd.f32 %v943_v54, %v2168_v3  ;;  %v2442_v3 = vadd.f32 %v945_v26, %v2178_v11  ;;  %v2449_v52 = vadd.f32 %v946_v5, %v2188_v20  ;;  %v938_v54 = vld [vmem:[#allocation8 + $0x1e0] sm:$0xff]  ;;  %v949_v11 = vmul.f32 %v933_v48, %v2202_v32  ;;  %v2467_v32 = vld [vmem:[#allocation11 + $0x8] sm:$0xff]  ;;  %v2498_v12 = vld [vmem:[#allocation11 + $0x18] sm:$0xff] }
  0xa5   :  { %1357 = vmatmul.mubr.f32.vlgmr.msra.gmra.mrb[0].mxu0 %v2396_v53  ;;  %v950_v26 = vmul.f32 %v934_v42, %v2211_v41  ;;  %v2461_v20 = vadd.f32 %v948_v7, %v2205_v37  ;;  %v953_v30 = vmul.f32 %v937_v33, %v2225_v51  ;;  %v2924_v41 = vpack.c.bf16 %v2290_v18, %v2287_v17  ;;  %v2482_v51 = vld [vmem:[#allocation10] sm:$0xff]  ;;  %v319_v48 = vld [vmem:[#allocation13 + $0x8] sm:$0xff]  ;;  %v2484_v42 = vld [vmem:[#allocation11 + $0x10] sm:$0xff] }
  0xa6   :  { %1654 = vmatpush3.bf16.msra.mxu0 %v2921_v13  ;;  %1426 = vmatprep.mubr.msk.f32.mxu0 %vm2005_vm0, %v2922_v55  ;;  %v939_v13 = vld [vmem:[#allocation8 + $0x1e8] sm:$0xff]  ;;  %v2473_v43 = vadd.f32 %v949_v11, %v2207_v38  ;;  %v2479_v37 = vadd.f32 %v951_v45, %v2219_v47  ;;  %v954_v50 = vmul.f32 %v938_v54, %v2229_v57  ;;  %v318_v5 = vld [vmem:[#allocation13] sm:$0xff]  ;;  %v321_v33 = vld [vmem:[#allocation13 + $0x18] sm:$0xff] }
  0xa7   :  { %1655 = vmatprep.subr.bf16.mxu0 %v2916_v35  ;;  %v2476_v28 = vadd.f32 %v950_v26, %v2217_v46  ;;  %2925 = vst [vmem:[#allocation34_spill] sm:$0xff] %v2482_v51  ;;  %2926 = vst [vmem:[#allocation35_spill] sm:$0xff] %v2484_v42  ;;  %v2490_v17 = vadd.f32 %v952_v22, %v2234_v61  ;;  %v2493_v46 = vadd.f32 %v953_v30, %v2236_v62  ;;  %v2496_v18 = vld [vmem:[#allocation10 + $0x8] sm:$0xff]  ;;  %v2508_v26 = vld [vmem:[#allocation10 + $0x10] sm:$0xff] }
  0xa8   :  { %v955_v47 = vmul.f32 %v939_v13, %v2232_v58  ;;  %2927 = vst [vmem:[#allocation36_spill] sm:$0xff] %v2496_v18  ;;  %2928 = vst [vmem:[#allocation37_spill] sm:$0xff] %v2498_v12  ;;  %v2505_v54 = vadd.f32 %v954_v50, %v2244_v14  ;;  %v956_v11 = vmul.f32 %v940_v1, %v2238_v63  ;;  %v2510_v45 = vld [vmem:[#allocation11 + $0x20] sm:$0xff]  ;;  %v2519_v9 = vld [vmem:[#allocation10 + $0x18] sm:$0xff] }
  0xa9   :  { %2929 = vst [vmem:[#allocation38_spill] sm:$0xff] %v2508_v26  ;;  %2930 = vst [vmem:[#allocation39_spill] sm:$0xff] %v2510_v45  ;;  %v322_v13 = vld [vmem:[#allocation13 + $0x20] sm:$0xff]  ;;  %v334_v7 = vmul.f32 %v318_v5, %v2465_v23  ;;  %v2521_v50 = vld [vmem:[#allocation11 + $0x28] sm:$0xff]  ;;  %v2933_v38 = vpack.c.bf16 %v2298_v31, %v2295_v29  ;;  %v336_v22 = vmul.f32 %v320_v21, %v2484_v42 }
  0xaa   :  { %1657 = vmatpush3.bf16.msra.mxu0 %v2924_v41  ;;  %v2515_v30 = vadd.f32 %v955_v47, %v2248_v19  ;;  %v957_v41 = vmul.f32 %v941_v49, %v2246_v15  ;;  %2931 = vst [vmem:[#allocation40_spill] sm:$0xff] %v2519_v9  ;;  %2932 = vst [vmem:[#allocation41_spill] sm:$0xff] %v2521_v50  ;;  %v323_v1 = vld [vmem:[#allocation13 + $0x28] sm:$0xff]  ;;  %v2527_v36 = vadd.f32 %v956_v11, %v2257_v39 }
  0xab   :  { %1658 = vmatprep.subr.bf16.mxu0 %v2916_v35  ;;  %v335_v47 = vmul.f32 %v319_v48, %v2467_v32  ;;  %v337_v49 = vmul.f32 %v321_v33, %v2498_v12  ;;  %v457_v5 = vld [vmem:[#allocation8 + $0xe8] sm:$0xff]  ;;  %v350_v29 = vadd.f32 %v334_v7, %v2482_v51  ;;  %v338_v31 = vmul.f32 %v322_v13, %v2510_v45  ;;  %v2543_v33 = vld [vmem:[#allocation10 + $0x20] sm:$0xff] }
  0xac   :  { %v2536_v23 = vadd.f32 %v957_v41, %v2259_v40  ;;  %v352_v48 = vadd.f32 %v336_v22, %v2508_v26  ;;  %v2545_v11 = vld [vmem:[#allocation10 + $0x28] sm:$0xff]  ;;  %v339_v12 = vmul.f32 %v323_v1, %v2521_v50  ;;  %v486_v41 = vadd.f32 %v2318_v56, %v2234_v61  ;;  %v324_v22 = vld [vmem:[#allocation13 + $0x30] sm:$0xff]  ;;  %v2934_v45 = vld [vmem:[#allocation20_spill] sm:$0xff] }
  0xad   :  { %v353_v21 = vadd.f32 %v337_v49, %v2519_v9  ;;  %v472_v7 = vmul.f32 %v456_v10, %v2229_v57  ;;  %v325_v49 = vld [vmem:[#allocation13 + $0x38] sm:$0xff]  ;;  %v2935_v9 = vpack.c.bf16 %v2315_v59, %v2934_v45  ;;  %v2936_v26 = vld [vmem:[#allocation22_spill] sm:$0xff]  ;;  %v2938_v42 = vld [vmem:[#allocation21_spill] sm:$0xff]  ;;  %v473_v61 = vmul.f32 %v457_v5, %v2232_v58 }
  0xae   :  { %1660 = vmatpush3.bf16.msra.mxu0 %v2933_v38  ;;  %v351_v38 = vadd.f32 %v335_v47, %v2496_v18  ;;  %v2555_v47 = vld [vmem:[#allocation11 + $0x38] sm:$0xff]  ;;  %v487_v18 = vadd.f32 %v2938_v42, %v2236_v62  ;;  %v458_v56 = vld [vmem:[#allocation8 + $0xf0] sm:$0xff]  ;;  %v354_v13 = vadd.f32 %v338_v31, %v2543_v33  ;;  %v355_v59 = vadd.f32 %v339_v12, %v2545_v11  ;;  %v2572_v62 = vld [vmem:[#allocation11 + $0x40] sm:$0xff] }
  0xaf   :  { %1661 = vmatprep.subr.bf16.mxu0 %v2916_v35  ;;  %v2937_v1 = vld [vmem:[#allocation23_spill] sm:$0xff]  ;;  %v1632_v51 = vpack.c.bf16 %v353_v21, %v352_v48  ;;  %v341_v45 = vmul.f32 %v325_v49, %v2555_v47  ;;  %v326_v58 = vld [vmem:[#allocation13 + $0x40] sm:$0xff]  ;;  %v488_v42 = vadd.f32 %v472_v7, %v2244_v14  ;;  %v327_v31 = vld [vmem:[#allocation13 + $0x48] sm:$0xff]  ;;  %v474_v48 = vmul.f32 %v458_v56, %v2238_v63 }
  0xb0   :  { %v1665_v50 = vpack.c.bf16 %v2937_v1, %v2936_v26  ;;  %v1629_v57 = vpack.c.bf16 %v351_v38, %v350_v29  ;;  %v459_v10 = vld [vmem:[#allocation8 + $0xf8] sm:$0xff]  ;;  %v340_v26 = vmul.f32 %v324_v22, %v2548_v25  ;;  %v2578_v29 = vld [vmem:[#allocation11 + $0x48] sm:$0xff]  ;;  %v1668_v12 = vpack.c.bf16 %v487_v18, %v486_v41  ;;  %v2587_v1 = vld [vmem:[#allocation10 + $0x40] sm:$0xff] }
  0xb1   :  { %v2576_v5 = vld [vmem:[#allocation10 + $0x38] sm:$0xff]  ;;  %v489_v38 = vadd.f32 %v473_v61, %v2248_v19  ;;  %v475_v21 = vmul.f32 %v459_v10, %v2246_v15  ;;  %v342_v22 = vmul.f32 %v326_v58, %v2572_v62  ;;  %v1635_v14 = vpack.c.bf16 %v355_v59, %v354_v13  ;;  %v328_v19 = vld [vmem:[#allocation13 + $0x50] sm:$0xff]  ;;  %v2593_v63 = vld [vmem:[#allocation10 + $0x48] sm:$0xff] }
  0xb2   :  { %1663 = vmatpush3.bf16.msra.mxu0 %v2935_v9  ;;  %1630 = vmatpush3.bf16.msra.mxu1 %v1629_v57  ;;  %v2568_v9 = vld [vmem:[#allocation10 + $0x30] sm:$0xff]  ;;  %v357_v49 = vadd.f32 %v341_v45, %v2576_v5  ;;  %v343_v18 = vmul.f32 %v327_v31, %v2578_v29  ;;  %v2595_v15 = vld [vmem:[#allocation11 + $0x58] sm:$0xff]  ;;  %v490_v13 = vadd.f32 %v474_v48, %v2257_v39  ;;  %v2606_v58 = vld [vmem:[#allocation11 + $0x60] sm:$0xff] }
  0xb3   :  { %1664 = vmatprep.subr.bf16.mxu0 %v2916_v35  ;;  %1631 = vmatprep.subr.bf16.mxu1 %v2916_v35  ;;  %v356_v7 = vadd.f32 %v340_v26, %v2568_v9  ;;  %v329_v41 = vld [vmem:[#allocation13 + $0x58] sm:$0xff]  ;;  %v491_v61 = vadd.f32 %v475_v21, %v2259_v40  ;;  %v358_v10 = vadd.f32 %v342_v22, %v2587_v1  ;;  %v2603_v26 = vld [vmem:[#allocation10 + $0x50] sm:$0xff]  ;;  %v2611_v40 = vld [vmem:[#allocation11 + $0x68] sm:$0xff] }
  0xb4   :  { %v359_v59 = vadd.f32 %v343_v18, %v2593_v63  ;;  %v345_v45 = vmul.f32 %v329_v41, %v2595_v15  ;;  %v2609_v39 = vld [vmem:[#allocation10 + $0x58] sm:$0xff]  ;;  %v331_v31 = vld [vmem:[#allocation13 + $0x68] sm:$0xff] }
  0xb5   :  { %v1638_v56 = vpack.c.bf16 %v357_v49, %v356_v7  ;;  %v2619_v7 = vld [vmem:[#allocation10 + $0x60] sm:$0xff]  ;;  %v2621_v49 = vld [vmem:[#allocation10 + $0x68] sm:$0xff] }
  0xb6   :  { %1666 = vmatpush3.bf16.msra.mxu0 %v1665_v50  ;;  %1633 = vmatpush3.bf16.msra.mxu1 %v1632_v51  ;;  %v2590_v50 = vld [vmem:[#allocation11 + $0x50] sm:$0xff]  ;;  %v1671_v51 = vpack.c.bf16 %v489_v38, %v488_v42  ;;  %v330_v42 = vld [vmem:[#allocation13 + $0x60] sm:$0xff]  ;;  %v1641_v48 = vpack.c.bf16 %v359_v59, %v358_v10  ;;  %v361_v22 = vadd.f32 %v345_v45, %v2609_v39  ;;  %v2945_v45 = vld [vmem:[#allocation29_spill] sm:$0xff] }
  0xb7   :  { %1667 = vmatprep.subr.bf16.mxu0 %v2916_v35  ;;  %1634 = vmatprep.subr.bf16.mxu1 %v2916_v35  ;;  %v344_v57 = vmul.f32 %v328_v19, %v2590_v50  ;;  %v346_v38 = vmul.f32 %v330_v42, %v2606_v58  ;;  %v2943_v10 = vld [vmem:[#allocation26_spill] sm:$0xff]  ;;  %v2946_v42 = vld [vmem:[#allocation28_spill] sm:$0xff] }
  0xb9   :  { %v360_v21 = vadd.f32 %v344_v57, %v2603_v26  ;;  %v362_v19 = vadd.f32 %v346_v38, %v2619_v7 }
  0xba   :  { %1669 = vmatpush3.bf16.msra.mxu0 %v1668_v12  ;;  %1636 = vmatpush3.bf16.msra.mxu1 %v1635_v14  ;;  %v1674_v12 = vpack.c.bf16 %v491_v61, %v490_v13  ;;  %v347_v14 = vmul.f32 %v331_v31, %v2611_v40  ;;  %v2940_v13 = vld [vmem:[#allocation24_spill] sm:$0xff]  ;;  %v2947_v31 = vpack.c.bf16 %v2945_v45, %v2946_v42  ;;  %v2719_v42 = vld [vmem:[%s2868_s4] ss:$0 sm:$0xff] }
  0xbb   :  { %1670 = vmatprep.subr.bf16.mxu0 %v2916_v35  ;;  %1637 = vmatprep.subr.bf16.mxu1 %v2916_v35  ;;  %v1644_v18 = vpack.c.bf16 %v361_v22, %v360_v21  ;;  %v2951_v21 = vld [vmem:[#allocation31_spill] sm:$0xff] }
  0xbc   :  { %v363_v41 = vadd.f32 %v347_v14, %v2621_v49  ;;  %v2953_v14 = vpack.c.bf16 %v2390_v27, %v2387_v60  ;;  %v2956_v27 = vpack.c.bf16 %v2428_v4, %v2425_v0  ;;  %v2958_v60 = vpack.c.bf16 %v2458_v8, %v2449_v52  ;;  %v332_v0 = vld [vmem:[#allocation13 + $0x70] sm:$0xff]  ;;  %v333_v4 = vld [vmem:[#allocation13 + $0x78] sm:$0xff] }
  0xbd   :  { %v2690_v8 = vld [vmem:[#allocation10 + $0x78] sm:$0xff] }
  0xbe   :  { %1672 = vmatpush3.bf16.msra.mxu0 %v1671_v51  ;;  %1639 = vmatpush3.bf16.msra.mxu1 %v1638_v56  ;;  %v2939_v51 = vld [vmem:[#allocation25_spill] sm:$0xff]  ;;  %v1647_v57 = vpack.c.bf16 %v363_v41, %v362_v19  ;;  %v2942_v56 = vld [vmem:[#allocation27_spill] sm:$0xff] }
  0xbf   :  { %1673 = vmatprep.subr.bf16.mxu0 %v2916_v35  ;;  %1640 = vmatprep.subr.bf16.mxu1 %v2916_v35  ;;  %v2941_v61 = vpack.c.bf16 %v2939_v51, %v2940_v13  ;;  %v2944_v59 = vpack.c.bf16 %v2942_v56, %v2943_v10  ;;  %v2961_v51 = vpack.c.bf16 %v2493_v46, %v2490_v17  ;;  %v564_v13 = vld [vmem:[#allocation13 + $0x80] sm:$0xff]  ;;  %v565_v17 = vld [vmem:[#allocation13 + $0x88] sm:$0xff]  ;;  %v566_v56 = vld [vmem:[#allocation13 + $0x90] sm:$0xff] }
  0xc0   :  { %v2964_v46 = vld [vmem:[#allocation33_spill] sm:$0xff]  ;;  %v567_v10 = vld [vmem:[#allocation13 + $0x98] sm:$0xff] }
  0xc2   :  { %1675 = vmatpush3.bf16.msra.mxu0 %v1674_v12  ;;  %1642 = vmatpush3.bf16.msra.mxu1 %v1641_v48  ;;  %v2948_v12 = vld [vmem:[#allocation30_spill] sm:$0xff]  ;;  %v2950_v48 = vld [vmem:[#allocation32_spill] sm:$0xff] }
  0xc3   :  { %1700 = vmatprep.subr.bf16.mxu0 %v2916_v35  ;;  %1643 = vmatprep.subr.bf16.mxu1 %v2916_v35  ;;  %v2949_v38 = vpack.c.bf16 %v2371_v44, %v2948_v12  ;;  %v2952_v22 = vpack.c.bf16 %v2950_v48, %v2951_v21  ;;  %v2955_v44 = vpack.c.bf16 %v2417_v24, %v2414_v34  ;;  %v2683_v34 = vld [vmem:[#allocation11 + $0x70] sm:$0xff]  ;;  %v2685_v24 = vld [vmem:[#allocation11 + $0x78] sm:$0xff]  ;;  %v568_v12 = vld [vmem:[#allocation13 + $0xa0] sm:$0xff] }
  0xc4   :  { %v349_v52 = vmul.f32 %v333_v4, %v2685_v24 }
  0xc5   :  { %1427 = vmatmul.mubr.f32.vlgmr.msra.gmra.mrb[2].mxu0 %v2396_v53 }
  0xc6   :  { %1702 = vmatpush3.bf16.msra.mxu0 %v2941_v61  ;;  %1496 = vmatprep.mubr.msk.f32.mxu0 %vm2005_vm0, %v2922_v55  ;;  %v365_v19 = vadd.f32 %v349_v52, %v2690_v8  ;;  %v580_v61 = vmul.f32 %v564_v13, %v2964_v46  ;;  %v571_v52 = vld [vmem:[#allocation13 + $0xb8] sm:$0xff]  ;;  %v573_v13 = vld [vmem:[#allocation13 + $0xc8] sm:$0xff] }
  0xc7   :  { %1703 = vmatprep.subr.bf16.mxu0 %v2916_v35  ;;  %1645 = vmatpush3.bf16.msra.mxu1 %v1644_v18  ;;  %v2954_v18 = vpack.c.bf16 %v2409_v6, %v2401_v16  ;;  %v2957_v16 = vpack.c.bf16 %v2442_v3, %v2439_v2  ;;  %v2959_v6 = vpack.c.bf16 %v2473_v43, %v2461_v20  ;;  %v2688_v3 = vld [vmem:[#allocation10 + $0x70] sm:$0xff] }
  0xc8   :  { %1646 = vmatprep.subr.bf16.mxu1 %v2916_v35  ;;  %v348_v2 = vmul.f32 %v332_v0, %v2683_v34  ;;  %v2960_v20 = vpack.c.bf16 %v2479_v37, %v2476_v28  ;;  %v2962_v28 = vpack.c.bf16 %v2515_v30, %v2505_v54  ;;  %v2963_v37 = vpack.c.bf16 %v2536_v23, %v2527_v36  ;;  %v2966_v54 = vld [vmem:[#allocation36_spill] sm:$0xff]  ;;  %v2967_v36 = vld [vmem:[#allocation35_spill] sm:$0xff]  ;;  %v2972_v0 = vld [vmem:[#allocation41_spill] sm:$0xff] }
  0xc9   :  { %v582_v23 = vmul.f32 %v566_v56, %v2967_v36 }
  0xca   :  { %1705 = vmatpush3.bf16.msra.mxu0 %v2944_v59  ;;  %v364_v43 = vadd.f32 %v348_v2, %v2688_v3  ;;  %v2965_v59 = vld [vmem:[#allocation34_spill] sm:$0xff] }
  0xcb   :  { %1706 = vmatprep.subr.bf16.mxu0 %v2916_v35  ;;  %1648 = vmatpush3.bf16.msra.mxu1 %v1647_v57  ;;  %v581_v57 = vmul.f32 %v565_v17, %v2467_v32  ;;  %v596_v45 = vadd.f32 %v580_v61, %v2965_v59  ;;  %v570_v2 = vld [vmem:[#allocation13 + $0xb0] sm:$0xff] }
  0xcc   :  { %1649 = vmatprep.subr.bf16.mxu1 %v2916_v35  ;;  %v1650_v41 = vpack.c.bf16 %v365_v19, %v364_v43  ;;  %v586_v43 = vmul.f32 %v570_v2, %v2548_v25  ;;  %v587_v19 = vmul.f32 %v571_v52, %v2555_v47  ;;  %v578_v2 = vld [vmem:[#allocation13 + $0xf0] sm:$0xff]  ;;  %v579_v52 = vld [vmem:[#allocation13 + $0xf8] sm:$0xff] }
  0xcd   :  { %v597_v30 = vadd.f32 %v581_v57, %v2966_v54 }
  0xce   :  { %1708 = vmatpush3.bf16.msra.mxu0 %v2947_v31  ;;  %v602_v17 = vadd.f32 %v586_v43, %v2568_v9  ;;  %v603_v61 = vadd.f32 %v587_v19, %v2576_v5 }
  0xcf   :  { %1709 = vmatprep.subr.bf16.mxu0 %v2916_v35  ;;  %1651 = vmatpush3.bf16.msra.mxu1 %v1650_v41 }
  0xd0   :  { %1676 = vmatprep.subr.bf16.mxu1 %v2916_v35 }
  0xd2   :  { %1711 = vmatpush3.bf16.msra.mxu0 %v2949_v38  ;;  %v569_v38 = vld [vmem:[#allocation13 + $0xa8] sm:$0xff] }
  0xd3   :  { %1712 = vmatprep.subr.bf16.mxu0 %v2916_v35  ;;  %v585_v4 = vmul.f32 %v569_v38, %v2972_v0 }
  0xd6   :  { %1714 = vmatpush3.bf16.msra.mxu0 %v2952_v22 }
  0xd7   :  { %1715 = vmatprep.subr.bf16.mxu0 %v2916_v35 }
  0xda   :  { %1717 = vmatpush3.bf16.msra.mxu0 %v2953_v14  ;;  %v1677_v14 = vpack.c.bf16 %v597_v30, %v596_v45  ;;  %v574_v45 = vld [vmem:[#allocation13 + $0xd0] sm:$0xff]  ;;  %v575_v30 = vld [vmem:[#allocation13 + $0xd8] sm:$0xff] }
  0xdb   :  { %1718 = vmatprep.subr.bf16.mxu0 %v2916_v35  ;;  %v590_v38 = vmul.f32 %v574_v45, %v2590_v50  ;;  %v808_v45 = vld [vmem:[#allocation13 + $0x118] sm:$0xff] }
  0xde   :  { %1720 = vmatpush3.bf16.msra.mxu0 %v2954_v18  ;;  %v2969_v18 = vld [vmem:[#allocation38_spill] sm:$0xff] }
  0xdf   :  { %1721 = vmatprep.subr.bf16.mxu0 %v2916_v35 }
  0xe2   :  { %1723 = vmatpush3.bf16.msra.mxu0 %v2955_v44  ;;  %v598_v44 = vadd.f32 %v582_v23, %v2969_v18  ;;  %v1686_v23 = vpack.c.bf16 %v603_v61, %v602_v17 }
  0xe3   :  { %1748 = vmatprep.subr.bf16.mxu0 %v2916_v35 }
  0xe5   :  { %1497 = vmatmul.mubr.f32.vlgmr.msra.gmra.mrb[4].mxu0 %v2396_v53 }
  0xe6   :  { %1750 = vmatpush3.bf16.msra.mxu0 %v2956_v27  ;;  %1566 = vmatprep.mubr.msk.f32.mxu0 %vm2005_vm0, %v2922_v55  ;;  %v2970_v27 = vld [vmem:[#allocation40_spill] sm:$0xff] }
  0xe7   :  { %1751 = vmatprep.subr.bf16.mxu0 %v2916_v35 }
  0xea   :  { %1753 = vmatpush3.bf16.msra.mxu0 %v2957_v16 }
  0xeb   :  { %1754 = vmatprep.subr.bf16.mxu0 %v2916_v35 }
  0xee   :  { %1756 = vmatpush3.bf16.msra.mxu0 %v2958_v60  ;;  %v2971_v60 = vld [vmem:[#allocation39_spill] sm:$0xff] }
  0xef   :  { %1757 = vmatprep.subr.bf16.mxu0 %v2916_v35 }
  0xf2   :  { %1759 = vmatpush3.bf16.msra.mxu0 %v2959_v6  ;;  %v584_v6 = vmul.f32 %v568_v12, %v2971_v60 }
  0xf3   :  { %1760 = vmatprep.subr.bf16.mxu0 %v2916_v35 }
  0xf6   :  { %1762 = vmatpush3.bf16.msra.mxu0 %v2960_v20 }
  0xf7   :  { %1763 = vmatprep.subr.bf16.mxu0 %v2916_v35 }
  0xfa   :  { %1765 = vmatpush3.bf16.msra.mxu0 %v2961_v51  ;;  %v600_v51 = vadd.f32 %v584_v6, %v2543_v33  ;;  %v606_v6 = vadd.f32 %v590_v38, %v2603_v26 }
  0xfb   :  { %1766 = vmatprep.subr.bf16.mxu0 %v2916_v35 }
  0xfe   :  { %1768 = vmatpush3.bf16.msra.mxu0 %v2962_v28  ;;  %v601_v28 = vadd.f32 %v585_v4, %v2545_v11 }
  0xff   :  { %1769 = vmatprep.subr.bf16.mxu0 %v2916_v35 }
 0x100   :  { %v1683_v57 = vpack.c.bf16 %v601_v28, %v600_v51  ;;  %v595_v51 = vmul.f32 %v579_v52, %v2685_v24  ;;  %v805_v28 = vld [vmem:[#allocation13 + $0x100] sm:$0xff] }
 0x102   :  { %1771 = vmatpush3.bf16.msra.mxu0 %v2963_v37  ;;  %v572_v37 = vld [vmem:[#allocation13 + $0xc0] sm:$0xff]  ;;  %v611_v61 = vadd.f32 %v595_v51, %v2690_v8 }
 0x103   :  { %v588_v56 = vmul.f32 %v572_v37, %v2572_v62  ;;  %v806_v37 = vld [vmem:[#allocation13 + $0x108] sm:$0xff] }
 0x105   :  { %1567 = vmatmul.mubr.f32.vlgmr.msra.gmra.mrb[6].mxu0 %v2396_v53  ;;  %v2968_v53 = vld [vmem:[#allocation37_spill] sm:$0xff] }
 0x106   :  { %v583_v31 = vmul.f32 %v567_v10, %v2968_v53  ;;  %v589_v10 = vmul.f32 %v573_v13, %v2578_v29 }
 0x108   :  { %v599_v16 = vadd.f32 %v583_v31, %v2970_v27  ;;  %v604_v31 = vadd.f32 %v588_v56, %v2587_v1  ;;  %v605_v12 = vadd.f32 %v589_v10, %v2593_v63  ;;  %v822_v56 = vmul.f32 %v806_v37, %v2467_v32  ;;  %v807_v10 = vld [vmem:[#allocation13 + $0x110] sm:$0xff] }
 0x10a   :  { %v1680_v41 = vpack.c.bf16 %v599_v16, %v598_v44  ;;  %v1689_v16 = vpack.c.bf16 %v605_v12, %v604_v31  ;;  %v838_v38 = vadd.f32 %v822_v56, %v2966_v54 }
 0x178   :  { %v313_v48 = vpop.f32.mrb[0].mxu0 }
 0x179   :  { %v314_v21 = vadd.f32 %v2719_v42, %v313_v48  ;;  %v1358_v22 = vpop.f32.mrb[1].mxu0  ;;  %v591_v48 = vmul.f32 %v575_v30, %v2595_v15  ;;  %v823_v30 = vmul.f32 %v807_v10, %v2967_v36 }
 0x17a   :  { %v577_v22 = vld [vmem:[#allocation13 + $0xe8] sm:$0xff] }
 0x17b   :  { %v317_v20 = vmax.f32 %v314_v21, 0.0  ;;  %v576_v21 = vld [vmem:[#allocation13 + $0xe0] sm:$0xff]  ;;  %v593_v44 = vmul.f32 %v577_v22, %v2611_v40  ;;  %v607_v4 = vadd.f32 %v591_v48, %v2609_v39 }
 0x17c   :  { %v809_v48 = vld [vmem:[#allocation13 + $0x120] sm:$0xff] }
 0x17d   :  { %1392 = vmatmul.mubr.f32.vlgmr.msra.gmra.mrb[0].mxu1 %v317_v20  ;;  %v609_v43 = vadd.f32 %v593_v44, %v2621_v49  ;;  %v1692_v19 = vpack.c.bf16 %v607_v4, %v606_v6  ;;  %v825_v4 = vmul.f32 %v809_v48, %v2971_v60 }
 0x17e   :  { %1678 = vmatpush3.bf16.msra.mxu1 %v1677_v14  ;;  %1461 = vmatprep.mubr.msk.f32.mxu1 %vm2005_vm0, %v2922_v55  ;;  %v592_v14 = vmul.f32 %v576_v21, %v2606_v58  ;;  %v810_v21 = vld [vmem:[#allocation13 + $0x128] sm:$0xff] }
 0x17f   :  { %1679 = vmatprep.subr.bf16.mxu1 %v2916_v35  ;;  %v826_v52 = vmul.f32 %v810_v21, %v2972_v0  ;;  %v841_v51 = vadd.f32 %v825_v4, %v2543_v33 }
 0x180   :  { %v608_v20 = vadd.f32 %v592_v14, %v2619_v7 }
 0x182   :  { %1681 = vmatpush3.bf16.msra.mxu1 %v1680_v41  ;;  %v594_v41 = vmul.f32 %v578_v2, %v2683_v34  ;;  %v1695_v13 = vpack.c.bf16 %v609_v43, %v608_v20  ;;  %v811_v43 = vld [vmem:[#allocation13 + $0x130] sm:$0xff] }
 0x183   :  { %1682 = vmatprep.subr.bf16.mxu1 %v2916_v35  ;;  %v827_v37 = vmul.f32 %v811_v43, %v2548_v25  ;;  %v820_v43 = vld [vmem:[#allocation13 + $0x178] sm:$0xff] }
 0x184   :  { %v610_v17 = vadd.f32 %v594_v41, %v2688_v3 }
 0x186   :  { %1684 = vmatpush3.bf16.msra.mxu1 %v1683_v57  ;;  %v821_v57 = vmul.f32 %v805_v28, %v2964_v46  ;;  %v1698_v31 = vpack.c.bf16 %v611_v61, %v610_v17  ;;  %v842_v28 = vadd.f32 %v826_v52, %v2545_v11  ;;  %v813_v17 = vld [vmem:[#allocation13 + $0x140] sm:$0xff]  ;;  %v814_v61 = vld [vmem:[#allocation13 + $0x148] sm:$0xff] }
 0x187   :  { %1685 = vmatprep.subr.bf16.mxu1 %v2916_v35  ;;  %v830_v56 = vmul.f32 %v814_v61, %v2578_v29 }
 0x188   :  { %v837_v12 = vadd.f32 %v821_v57, %v2965_v59  ;;  %v829_v57 = vmul.f32 %v813_v17, %v2572_v62  ;;  %v1731_v10 = vpack.c.bf16 %v842_v28, %v841_v51  ;;  %v1047_v17 = vld [vmem:[#allocation13 + $0x188] sm:$0xff] }
 0x18a   :  { %1687 = vmatpush3.bf16.msra.mxu1 %v1686_v23  ;;  %v824_v23 = vmul.f32 %v808_v45, %v2968_v53  ;;  %v1725_v2 = vpack.c.bf16 %v838_v38, %v837_v12  ;;  %v843_v45 = vadd.f32 %v827_v37, %v2568_v9  ;;  %v845_v12 = vadd.f32 %v829_v57, %v2587_v1 }
 0x18b   :  { %1688 = vmatprep.subr.bf16.mxu1 %v2916_v35  ;;  %v846_v38 = vadd.f32 %v830_v56, %v2593_v63 }
 0x18c   :  { %v840_v6 = vadd.f32 %v824_v23, %v2970_v27  ;;  %v815_v23 = vld [vmem:[#allocation13 + $0x150] sm:$0xff] }
 0x18d   :  { %v831_v21 = vmul.f32 %v815_v23, %v2590_v50  ;;  %v1049_v23 = vld [vmem:[#allocation13 + $0x198] sm:$0xff] }
 0x18e   :  { %1690 = vmatpush3.bf16.msra.mxu1 %v1689_v16  ;;  %v839_v16 = vadd.f32 %v823_v30, %v2969_v18 }
 0x18f   :  { %1691 = vmatprep.subr.bf16.mxu1 %v2916_v35 }
 0x190   :  { %v1728_v41 = vpack.c.bf16 %v840_v6, %v839_v16  ;;  %v1737_v16 = vpack.c.bf16 %v846_v38, %v845_v12  ;;  %v847_v6 = vadd.f32 %v831_v21, %v2603_v26  ;;  %v1065_v21 = vmul.f32 %v1049_v23, %v2968_v53  ;;  %v1052_v53 = vld [vmem:[#allocation13 + $0x1b0] sm:$0xff]  ;;  %v1187_v23 = vld [vmem:[%s2872_s8] ss:$0 sm:$0xff]  ;;  %s1963_s8 = scalar_lea.vmem %s1172_s11, 512 }
 0x191   :  { %p1964_p0 = scmp.ne.s32.totalorder %s1172_s11, %s1963_s8  ;;  %p1969_p2 = scmp.lt.s32.totalorder %s1963_s8, %s1963_s8 }
 0x192   :  { %1693 = vmatpush3.bf16.msra.mxu1 %v1692_v19  ;;  %v812_v19 = vld [vmem:[#allocation13 + $0x138] sm:$0xff] }
 0x193   :  { %1694 = vmatprep.subr.bf16.mxu1 %v2916_v35  ;;  %p1970_p3 = por %p1969_p2, %p1968_p1 }
 0x195   :  { %p1971_p4 = pnand %p1970_p3, %p1964_p0 }
 0x196   :  { %1696 = vmatpush3.bf16.msra.mxu1 %v1695_v13  ;;  %v828_v13 = vmul.f32 %v812_v19, %v2555_v47 }
 0x197   :  { %1697 = vmatprep.subr.bf16.mxu1 %v2916_v35 }
 0x198   :  { %v558_v22 = vpop.f32.mrb[2].mxu0  ;;  %v844_v30 = vadd.f32 %v828_v13, %v2576_v5  ;;  %v1046_v13 = vld [vmem:[#allocation13 + $0x180] sm:$0xff] }
 0x199   :  { %v559_v14 = vadd.f32 %v2719_v42, %v558_v22  ;;  %v1428_v44 = vpop.f32.mrb[3].mxu0 }
 0x19a   :  { %1699 = vmatpush3.bf16.msra.mxu1 %v1698_v31  ;;  %v816_v31 = vld [vmem:[#allocation13 + $0x158] sm:$0xff]  ;;  %v1734_v48 = vpack.c.bf16 %v844_v30, %v843_v45  ;;  %v818_v44 = vld [vmem:[#allocation13 + $0x168] sm:$0xff]  ;;  %v1063_v45 = vmul.f32 %v1047_v17, %v2467_v32  ;;  %v1048_v30 = vld [vmem:[#allocation13 + $0x190] sm:$0xff] }
 0x19b   :  { %v562_v20 = vmax.f32 %v559_v14, 0.0  ;;  %1724 = vmatprep.subr.bf16.mxu1 %v2916_v35  ;;  %v832_v22 = vmul.f32 %v816_v31, %v2595_v15  ;;  %v817_v14 = vld [vmem:[#allocation13 + $0x160] sm:$0xff]  ;;  %v834_v52 = vmul.f32 %v818_v44, %v2611_v40 }
 0x19c   :  { %v1079_v38 = vadd.f32 %v1063_v45, %v2966_v54 }
 0x19d   :  { %1462 = vmatmul.mubr.f32.vlgmr.msra.gmra.mrb[2].mxu1 %v562_v20  ;;  %v848_v4 = vadd.f32 %v832_v22, %v2609_v39  ;;  %v819_v20 = vld [vmem:[#allocation13 + $0x170] sm:$0xff]  ;;  %v850_v37 = vadd.f32 %v834_v52, %v2621_v49  ;;  %v1050_v22 = vld [vmem:[#allocation13 + $0x1a0] sm:$0xff] }
 0x19e   :  { %1726 = vmatpush3.bf16.msra.mxu1 %v1725_v2  ;;  %1531 = vmatprep.mubr.msk.f32.mxu1 %vm2005_vm0, %v2922_v55  ;;  %v833_v2 = vmul.f32 %v817_v14, %v2606_v58  ;;  %v835_v19 = vmul.f32 %v819_v20, %v2683_v34  ;;  %v1051_v14 = vld [vmem:[#allocation13 + $0x1a8] sm:$0xff] }
 0x19f   :  { %1727 = vmatprep.subr.bf16.mxu1 %v2916_v35  ;;  %v1740_v51 = vpack.c.bf16 %v848_v4, %v847_v6  ;;  %v1067_v6 = vmul.f32 %v1051_v14, %v2972_v0  ;;  %v1068_v0 = vmul.f32 %v1052_v53, %v2548_v25  ;;  %v1056_v25 = vld [vmem:[#allocation13 + $0x1d0] sm:$0xff] }
 0x1a0   :  { %v849_v28 = vadd.f32 %v833_v2, %v2619_v7  ;;  %v851_v61 = vadd.f32 %v835_v19, %v2688_v3  ;;  %v1053_v2 = vld [vmem:[#allocation13 + $0x1b8] sm:$0xff] }
 0x1a1   :  { %v1083_v20 = vadd.f32 %v1067_v6, %v2545_v11 }
 0x1a2   :  { %1729 = vmatpush3.bf16.msra.mxu1 %v1728_v41  ;;  %v836_v41 = vmul.f32 %v820_v43, %v2685_v24  ;;  %v1743_v56 = vpack.c.bf16 %v850_v37, %v849_v28  ;;  %v1069_v43 = vmul.f32 %v1053_v2, %v2555_v47  ;;  %v1057_v28 = vld [vmem:[#allocation13 + $0x1d8] sm:$0xff] }
 0x1a3   :  { %1730 = vmatprep.subr.bf16.mxu1 %v2916_v35  ;;  %v1073_v47 = vmul.f32 %v1057_v28, %v2595_v15 }
 0x1a4   :  { %v852_v57 = vadd.f32 %v836_v41, %v2690_v8  ;;  %v1084_v41 = vadd.f32 %v1068_v0, %v2568_v9 }
 0x1a5   :  { %v1089_v17 = vadd.f32 %v1073_v47, %v2609_v39 }
 0x1a6   :  { %1732 = vmatpush3.bf16.msra.mxu1 %v1731_v10  ;;  %v1062_v10 = vmul.f32 %v1046_v13, %v2964_v46  ;;  %v1746_v31 = vpack.c.bf16 %v852_v57, %v851_v61  ;;  %v1060_v57 = vld [vmem:[#allocation13 + $0x1f0] sm:$0xff] }
 0x1a7   :  { %1733 = vmatprep.subr.bf16.mxu1 %v2916_v35 }
 0x1a8   :  { %v1078_v12 = vadd.f32 %v1062_v10, %v2965_v59 }
 0x1aa   :  { %1735 = vmatpush3.bf16.msra.mxu1 %v1734_v48  ;;  %v1064_v48 = vmul.f32 %v1048_v30, %v2967_v36  ;;  %v1773_v59 = vpack.c.bf16 %v1079_v38, %v1078_v12  ;;  %v1081_v36 = vadd.f32 %v1065_v21, %v2970_v27  ;;  %v1055_v27 = vld [vmem:[#allocation13 + $0x1c8] sm:$0xff] }
 0x1ab   :  { %1736 = vmatprep.subr.bf16.mxu1 %v2916_v35 }
 0x1ac   :  { %v1080_v54 = vadd.f32 %v1064_v48, %v2969_v18  ;;  %v1054_v18 = vld [vmem:[#allocation13 + $0x1c0] sm:$0xff] }
 0x1ad   :  { %v1070_v11 = vmul.f32 %v1054_v18, %v2572_v62  ;;  %v1059_v62 = vld [vmem:[#allocation13 + $0x1e8] sm:$0xff] }
 0x1ae   :  { %1738 = vmatpush3.bf16.msra.mxu1 %v1737_v16  ;;  %v1066_v16 = vmul.f32 %v1050_v22, %v2971_v60  ;;  %v1776_v60 = vpack.c.bf16 %v1081_v36, %v1080_v54  ;;  %v1075_v15 = vmul.f32 %v1059_v62, %v2611_v40 }
 0x1af   :  { %1739 = vmatprep.subr.bf16.mxu1 %v2916_v35  ;;  %v1086_v13 = vadd.f32 %v1070_v11, %v2587_v1  ;;  %v1061_v1 = vld [vmem:[#allocation13 + $0x1f8] sm:$0xff] }
 0x1b0   :  { %v1082_v52 = vadd.f32 %v1066_v16, %v2543_v33  ;;  %v1085_v33 = vadd.f32 %v1069_v43, %v2576_v5  ;;  %v1058_v5 = vld [vmem:[#allocation13 + $0x1e0] sm:$0xff]  ;;  %v1091_v10 = vadd.f32 %v1075_v15, %v2621_v49  ;;  %v1077_v39 = vmul.f32 %v1061_v1, %v2685_v24 }
 0x1b2   :  { %1741 = vmatpush3.bf16.msra.mxu1 %v1740_v51  ;;  %v1779_v19 = vpack.c.bf16 %v1083_v20, %v1082_v52  ;;  %v1071_v51 = vmul.f32 %v1055_v27, %v2578_v29  ;;  %v1782_v37 = vpack.c.bf16 %v1085_v33, %v1084_v41  ;;  %v1093_v45 = vadd.f32 %v1077_v39, %v2690_v8 }
 0x1b3   :  { %1742 = vmatprep.subr.bf16.mxu1 %v2916_v35 }
 0x1b4   :  { %v1087_v9 = vadd.f32 %v1071_v51, %v2593_v63 }
 0x1b6   :  { %1744 = vmatpush3.bf16.msra.mxu1 %v1743_v56  ;;  %v1785_v61 = vpack.c.bf16 %v1087_v9, %v1086_v13 }
 0x1b7   :  { %1745 = vmatprep.subr.bf16.mxu1 %v2916_v35 }
 0x1b8   :  { %v799_v46 = vpop.f32.mrb[4].mxu0 }
 0x1b9   :  { %v800_v32 = vadd.f32 %v2719_v42, %v799_v46  ;;  %v1498_v44 = vpop.f32.mrb[5].mxu0 }
 0x1ba   :  { %1747 = vmatpush3.bf16.msra.mxu1 %v1746_v31 }
 0x1bb   :  { %v803_v4 = vmax.f32 %v800_v32, 0.0  ;;  %1772 = vmatprep.subr.bf16.mxu1 %v2916_v35 }
 0x1bd   :  { %1532 = vmatmul.mubr.f32.vlgmr.msra.gmra.mrb[4].mxu1 %v803_v4 }
 0x1be   :  { %1774 = vmatpush3.bf16.msra.mxu1 %v1773_v59  ;;  %1601 = vmatprep.mubr.msk.f32.mxu1 %vm2005_vm0, %v2922_v55  ;;  %v1072_v55 = vmul.f32 %v1056_v25, %v2590_v50  ;;  %v1074_v50 = vmul.f32 %v1058_v5, %v2606_v58 }
 0x1bf   :  { %1775 = vmatprep.subr.bf16.mxu1 %v2916_v35 }
 0x1c0   :  { %v1088_v29 = vadd.f32 %v1072_v55, %v2603_v26  ;;  %v1090_v63 = vadd.f32 %v1074_v50, %v2619_v7  ;;  %v1076_v26 = vmul.f32 %v1060_v57, %v2683_v34 }
 0x1c2   :  { %1777 = vmatpush3.bf16.msra.mxu1 %v1776_v60  ;;  %v1788_v56 = vpack.c.bf16 %v1089_v17, %v1088_v29  ;;  %v1791_v58 = vpack.c.bf16 %v1091_v10, %v1090_v63  ;;  %v1092_v40 = vadd.f32 %v1076_v26, %v2688_v3 }
 0x1c3   :  { %1778 = vmatprep.subr.bf16.mxu1 %v2916_v35 }
 0x1c4   :  { %v1794_v30 = vpack.c.bf16 %v1093_v45, %v1092_v40 }
 0x1c6   :  { %1780 = vmatpush3.bf16.msra.mxu1 %v1779_v19 }
 0x1c7   :  { %1781 = vmatprep.subr.bf16.mxu1 %v2916_v35 }
 0x1ca   :  { %1783 = vmatpush3.bf16.msra.mxu1 %v1782_v37 }
 0x1cb   :  { %1784 = vmatprep.subr.bf16.mxu1 %v2916_v35 }
 0x1ce   :  { %1786 = vmatpush3.bf16.msra.mxu1 %v1785_v61 }
 0x1cf   :  { %1787 = vmatprep.subr.bf16.mxu1 %v2916_v35 }
 0x1d2   :  { %1789 = vmatpush3.bf16.msra.mxu1 %v1788_v56 }
 0x1d3   :  { %1790 = vmatprep.subr.bf16.mxu1 %v2916_v35 }
 0x1d6   :  { %1792 = vmatpush3.bf16.msra.mxu1 %v1791_v58 }
 0x1d7   :  { %1793 = vmatprep.subr.bf16.mxu1 %v2916_v35 }
 0x1d8   :  { %v1040_v7 = vpop.f32.mrb[6].mxu0 }
 0x1d9   :  { %v1041_v49 = vadd.f32 %v2719_v42, %v1040_v7  ;;  %v1568_v34 = vpop.f32.mrb[7].mxu0 }
 0x1da   :  { %1795 = vmatpush3.bf16.msra.mxu1 %v1794_v30 }
 0x1db   :  { %v1044_v24 = vmax.f32 %v1041_v49, 0.0 }
 0x1dd   :  { %1602 = vmatmul.mubr.f32.vlgmr.msra.gmra.mrb[6].mxu1 %v1044_v24 }
 0x250   :  { %v438_v3 = vpop.f32.mrb[0].mxu1 }
 0x251   :  { %v439_v31 = vadd.f32 %v1187_v23, %v438_v3  ;;  %v1393_v8 = vpop.f32.mrb[1].mxu1 }
 0x253   :  { %442 = vst [vmem:[#allocation14] sm:$0xff] %v439_v31 }
 0x270   :  { %v678_v12 = vpop.f32.mrb[2].mxu1 }
 0x271   :  { %v679_v38 = vadd.f32 %v1187_v23, %v678_v12  ;;  %v1463_v48 = vpop.f32.mrb[3].mxu1 }
 0x273   :  { %683 = vst [vmem:[#allocation14 + $0x8] sm:$0xff] %v679_v38 }
 0x290   :  { %v919_v35 = vpop.f32.mrb[4].mxu1 }
 0x291   :  { %v920_v21 = vadd.f32 %v1187_v23, %v919_v35  ;;  %v1533_v22 = vpop.f32.mrb[5].mxu1 }
 0x293   :  { %924 = vst [vmem:[#allocation14 + $0x10] sm:$0xff] %v920_v21 }
 0x2b0   :  { %v1160_v42 = vpop.f32.mrb[6].mxu1 }
 0x2b1   :  { %v1161_v14 = vadd.f32 %v1187_v23, %v1160_v42  ;;  %v1603_v46 = vpop.f32.mrb[7].mxu1 }
 0x2b3   :  { %1165 = vst [vmem:[#allocation14 + $0x18] sm:$0xff] %v1161_v14 }
 0x2b4   :  { %1974 = shalt.err (!%p1971_p4)
}
 0x2b5   :  { %s1975_s1 = scalar_lea.hbm %s2873_s9, 512 }
 0x2b6   :  { %p1976_p5 = scmp.ne.s32.totalorder %s2873_s9, %s1975_s1  ;;  %p1979_p6 = scmp.lt.u32.totalorder %s1975_s1, %s2873_s9 }
 0x2b8   :  { %p1981_p7 = pnand %p1979_p6, %p1976_p5 }
 0x2ba   :  { %1984 = shalt.err (!%p1981_p7)
}
 0x2bb   :  { %1177 = dma.vmem_to_hbm [thread:$0]  %s1172_s11, 512, %s2873_s9, [#allocation4], %s1996_s19, %s1996_s19, %s1997_s20  }
 0x2bc   :  { %1993 = dma.done.wait [#allocation4], 512  }
 0x2bd   :  { %1994 = vsyncadd [#allocation4], 4294966784 }
 0x2be   :  { %1181 = vsyncpa [#allocation3], 1 }
 0x2bf   :  { %1182 = vsyncpa [#allocation6], 1 }
 0x2c0   :  { %1183 = vsyncpa [#allocation9], 1 }
 0x2c1   :  { %1184 = vsyncpa [#allocation12], 1 }
 0x2c2   :  { %1185 = vsyncpa [#allocation4], 1 }

</bundles_post_ra>
